<compile_context>
chip_gen: v6e
topology: v6e:2x2x1
jax: 0.10.0
libtpu: 0.0.40
codegen_flags: <defaults>
</compile_context>

<pallas_src>
import functools

import jax
import jax.numpy as jnp
from jax.experimental import pallas as pl
from jax.experimental.pallas import tpu as pltpu


# ----------------------------------------------------------------------------
# Pallas kernel: fused (patches @ weight) + bias + activation, K-tiled
# ----------------------------------------------------------------------------
def _conv_mm_kernel(p_ref, w_ref, b_ref, o_ref, acc_ref, *, act):
    # p_ref: [TM, TK]   bf16 patch tile
    # w_ref: [TK, Np]   bf16 weight tile
    # b_ref: [1,  Np]   f32 bias (broadcast over rows)
    # o_ref: [TM, Np]   f32 output tile (resident across K axis)
    # acc_ref: [TM, Np] f32 accumulator scratch
    k = pl.program_id(1)

    @pl.when(k == 0)
    def _():
        acc_ref[...] = jnp.zeros_like(acc_ref)

    acc_ref[...] += jnp.dot(p_ref[...], w_ref[...],
                            preferred_element_type=jnp.float32)

    @pl.when(k == pl.num_programs(1) - 1)
    def _():
        acc = acc_ref[...] + b_ref[...]
        if act == "leaky":
            acc = jnp.where(acc >= 0.0, acc, 0.2 * acc)
        elif act == "sigmoid":
            # exp -> EUP, approx reciprocal -> EUP: epilogue stays off VALU/MXU path.
            acc = pl.reciprocal(1.0 + jnp.exp(-acc), approx=True)
        o_ref[...] = acc.astype(o_ref.dtype)


def _round_up(x, m):
    return ((x + m - 1) // m) * m


def _im2col_k4s2p1_nhwc(x):
    """x: (N, H, W, C) -> patches (N*Ho*Wo, 16*C), Ho, Wo   for k=4,s=2,p=1.

    Column order is (kh, kw, c_in), matching w.transpose(2,3,1,0).reshape(-1, Cout).
    """
    N, H, W, C = x.shape
    Ho, Wo = (H + 2 - 4) // 2 + 1, (W + 2 - 4) // 2 + 1
    xp = jnp.pad(x, ((0, 0), (1, 1), (1, 1), (0, 0)))
    cols = []
    for kh in range(4):
        for kw in range(4):
            cols.append(xp[:, kh:kh + 2 * Ho:2, kw:kw + 2 * Wo:2, :])  # (N,Ho,Wo,C)
    p = jnp.stack(cols, axis=3)                       # (N, Ho, Wo, 16, C)
    p = p.reshape(N * Ho * Wo, 16 * C)                # (M, K)
    return p, Ho, Wo


def conv4s2p1_fused(x_nhwc, w, b, act, *, tm_max=256, tk_max=1024):
    """Conv2d(k=4, s=2, p=1) + activation.  NHWC in / NHWC out."""
    N, H, W, Cin = x_nhwc.shape
    Cout = w.shape[0]

    p, Ho, Wo = _im2col_k4s2p1_nhwc(x_nhwc)
    M, K = p.shape
    # (Cout, Cin, 4, 4) -> (kh, kw, Cin, Cout) -> (16*Cin, Cout)
    wm = jnp.transpose(w, (2, 3, 1, 0)).reshape(K, Cout)

    # --- tiling: M tiled (parallel), K tiled (reduction), N (=Cout) whole ---
    Mp = _round_up(M, 16)                       # bf16 sublane packing
    TM = tm_max if Mp >= tm_max else Mp
    Mp = _round_up(Mp, TM)
    Kp = _round_up(K, 128)
    TK = tk_max if Kp >= tk_max else Kp
    Kp = _round_up(Kp, TK)
    Np = _round_up(Cout, 128)

    # bf16 MXU operands, f32 bias/accumulation (zero-padding K/N is benign).
    p_pad = jnp.pad(p, ((0, Mp - M), (0, Kp - K))).astype(jnp.bfloat16)
    w_pad = jnp.pad(wm, ((0, Kp - K), (0, Np - Cout))).astype(jnp.bfloat16)
    b_pad = jnp.pad(b, (0, Np - Cout)).reshape(1, Np).astype(jnp.float32)

    grid = (Mp // TM, Kp // TK)

    out = pl.pallas_call(
        functools.partial(_conv_mm_kernel, act=act),
        out_shape=jax.ShapeDtypeStruct((Mp, Np), jnp.float32),
        grid_spec=pltpu.PrefetchScalarGridSpec(
            num_scalar_prefetch=0,
            grid=grid,
            in_specs=[
                pl.BlockSpec((TM, TK), lambda i, k: (i, k)),   # patches
                pl.BlockSpec((TK, Np), lambda i, k: (k, 0)),   # weight
                pl.BlockSpec((1, Np), lambda i, k: (0, 0)),    # bias
            ],
            out_specs=pl.BlockSpec((TM, Np), lambda i, k: (i, 0)),
            scratch_shapes=[pltpu.VMEM((TM, Np), jnp.float32)],
        ),
        compiler_params=pltpu.CompilerParams(
            dimension_semantics=("parallel", "arbitrary")),
    )(p_pad, w_pad, b_pad)

    y = out[:M, :Cout].reshape(N, Ho, Wo, Cout)      # stays NHWC
    return y


# ----------------------------------------------------------------------------
# FCDiscriminator forward
# ----------------------------------------------------------------------------
def init_params(key, input_nc, ndf=32):
    """Deterministic conv params (PyTorch-style uniform(+-1/sqrt(fan_in)))."""
    chans = [(input_nc, ndf), (ndf, ndf * 2), (ndf * 2, ndf * 4),
             (ndf * 4, ndf * 8), (ndf * 8, 1)]
    params = []
    for i, (cin, cout) in enumerate(chans):
        kw_key, kb_key = jax.random.split(jax.random.fold_in(key, i))
        fan_in = cin * 4 * 4
        bound = 1.0 / jnp.sqrt(fan_in)
        w = jax.random.uniform(kw_key, (cout, cin, 4, 4), jnp.float32, -bound, bound)
        b = jax.random.uniform(kb_key, (cout,), jnp.float32, -bound, bound)
        params.append((w, b))
    return params


def _forward_impl(params, x_nchw, gan):
    (w1, b1), (w2, b2), (w3, b3), (w4, b4), (wc, bc) = params
    x = jnp.transpose(x_nchw, (0, 2, 3, 1))          # NCHW -> NHWC once
    x = conv4s2p1_fused(x, w1, b1, act="leaky")
    x = conv4s2p1_fused(x, w2, b2, act="leaky")
    x = conv4s2p1_fused(x, w3, b3, act="leaky")
    x = conv4s2p1_fused(x, w4, b4, act="leaky")
    x = conv4s2p1_fused(x, wc, bc, act="sigmoid" if gan == "vanilla" else "none")
    return jnp.transpose(x, (0, 3, 1, 2))            # NHWC -> NCHW at the boundary


fc_discriminator_forward = jax.jit(_forward_impl, static_argnames=("gan",))


# ----------------------------------------------------------------------------
# Pure-JAX reference (lax.conv) for a correctness check
# ----------------------------------------------------------------------------
def _ref_forward(params, x, gan="vanilla"):
    def conv(x, w, b):
        y = jax.lax.conv_general_dilated(
            x, w, window_strides=(2, 2), padding=((1, 1), (1, 1)),
            dimension_numbers=("NCHW", "OIHW", "NCHW"))
        return y + b.reshape(1, -1, 1, 1)

    (w1, b1), (w2, b2), (w3, b3), (w4, b4), (wc, bc) = params
    lrelu = lambda t: jnp.where(t >= 0, t, 0.2 * t)
    x = lrelu(conv(x, w1, b1))
    x = lrelu(conv(x, w2, b2))
    x = lrelu(conv(x, w3, b3))
    x = lrelu(conv(x, w4, b4))
    x = conv(x, wc, bc)
    if gan == "vanilla":
        x = jax.nn.sigmoid(x)
    return x


if __name__ == "__main__":
    key = jax.random.PRNGKey(0)
    k_param, k_x = jax.random.split(key)

    input_nc, ndf = 4, 32
    # 5 stride-2 convs: 32 -> 16 -> 8 -> 4 -> 2 -> 1
    x = jax.random.normal(k_x, (2, input_nc, 32, 32), jnp.float32)
    params = init_params(k_param, input_nc, ndf)

    y = fc_discriminator_forward(params, x, gan="vanilla")
    y = jax.block_until_ready(y)
    assert y.shape == (2, 1, 1, 1), y.shape

    y_ref = _ref_forward(params, x, gan="vanilla")
    if not jnp.allclose(y, y_ref, rtol=2e-2, atol=2e-2):
        raise AssertionError("Pallas output mismatch vs lax.conv reference")

    print("KERNEL_OK")
</pallas_src>

<mosaic_0001>
module attributes {stable_mosaic.version = 11 : i64} {
  func.func @_conv_mm_kernel(%arg0: i32, %arg1: i32, %arg2: memref<256x128xbf16, #tpu.memory_space<vmem>>, %arg3: memref<128x128xbf16, #tpu.memory_space<vmem>>, %arg4: memref<1x128xf32, #tpu.memory_space<vmem>>, %arg5: memref<256x128xf32, #tpu.memory_space<vmem>>, %arg6: memref<256x128xf32, #tpu.memory_space<vmem>>) attributes {dimension_semantics = [#tpu.dimension_semantics<parallel>, #tpu.dimension_semantics<arbitrary>], iteration_bounds = array<i64: 2, 1>, scalar_prefetch = 0 : i64, scratch_operands = 1 : i64, tpu.core_type = #tpu.core_type<tc>, window_params = [{transform_indices = @transform_0, window_bounds = array<i64: 256, 128>}, {transform_indices = @transform_1, window_bounds = array<i64: 128, 128>}, {pipeline_mode = #tpu.pipeline_mode<synchronous>, transform_indices = @transform_2, window_bounds = array<i64: 1, 128>}, {transform_indices = @transform_3, window_bounds = array<i64: 256, 128>}]} {
    %c0_i32 = arith.constant 0 : i32
    %0 = arith.cmpi eq, %arg1, %c0_i32 : i32
    %1 = arith.extui %0 : i1 to i32
    %c0_i32_0 = arith.constant 0 : i32
    %2 = arith.cmpi ne, %1, %c0_i32_0 : i32
    scf.if %2 {
      %cst_10 = arith.constant 0.000000e+00 : f32
      %12 = vector.broadcast %cst_10 : f32 to vector<256x128xf32>
      %c0_11 = arith.constant 0 : index
      %c0_12 = arith.constant 0 : index
      %13 = vector.load %arg6[%c0_11, %c0_12] : memref<256x128xf32, #tpu.memory_space<vmem>>, vector<256x128xf32>
      tpu.vector_store %arg6[%c0_11, %c0_12], %12 {strides = array<i32>} : memref<256x128xf32, #tpu.memory_space<vmem>>, vector<256x128xf32>,
    } else {
    }
    %c0 = arith.constant 0 : index
    %c0_1 = arith.constant 0 : index
    %3 = vector.load %arg6[%c0, %c0_1] : memref<256x128xf32, #tpu.memory_space<vmem>>, vector<256x128xf32>
    %c0_2 = arith.constant 0 : index
    %c0_3 = arith.constant 0 : index
    %4 = vector.load %arg2[%c0_2, %c0_3] : memref<256x128xbf16, #tpu.memory_space<vmem>>, vector<256x128xbf16>
    %c0_4 = arith.constant 0 : index
    %c0_5 = arith.constant 0 : index
    %5 = vector.load %arg3[%c0_4, %c0_5] : memref<128x128xbf16, #tpu.memory_space<vmem>>, vector<128x128xbf16>
    %cst = arith.constant dense<0.000000e+00> : vector<256x128xf32>
    %6 = tpu.matmul %4, %5, %cst {dimension_numbers = #tpu.dot_dimension_numbers<[1], [0], [0], [1], [0, 0, 1, 1], [], []>} : vector<256x128xbf16>, vector<128x128xbf16>, vector<256x128xf32> -> vector<256x128xf32>
    %7 = arith.addf %3, %6 : vector<256x128xf32>
    %c0_6 = arith.constant 0 : index
    %c0_7 = arith.constant 0 : index
    %8 = vector.load %arg6[%c0_6, %c0_7] : memref<256x128xf32, #tpu.memory_space<vmem>>, vector<256x128xf32>
    tpu.vector_store %arg6[%c0_6, %c0_7], %7 {strides = array<i32>} : memref<256x128xf32, #tpu.memory_space<vmem>>, vector<256x128xf32>,
    %c0_i32_8 = arith.constant 0 : i32
    %9 = arith.cmpi eq, %arg1, %c0_i32_8 : i32
    %10 = arith.extui %9 : i1 to i32
    %c0_i32_9 = arith.constant 0 : i32
    %11 = arith.cmpi ne, %10, %c0_i32_9 : i32
    scf.if %11 {
      %c0_10 = arith.constant 0 : index
      %c0_11 = arith.constant 0 : index
      %12 = vector.load %arg6[%c0_10, %c0_11] : memref<256x128xf32, #tpu.memory_space<vmem>>, vector<256x128xf32>
      %c0_12 = arith.constant 0 : index
      %c0_13 = arith.constant 0 : index
      %13 = vector.load %arg4[%c0_12, %c0_13] : memref<1x128xf32, #tpu.memory_space<vmem>>, vector<1x128xf32>
      %14 = vector.broadcast %13 : vector<1x128xf32> to vector<256x128xf32>
      %15 = arith.addf %12, %14 : vector<256x128xf32>
      %cst_14 = arith.constant 0.000000e+00 : f32
      %16 = vector.broadcast %cst_14 : f32 to vector<256x128xf32>
      %17 = arith.cmpf oge, %15, %16 : vector<256x128xf32>
      %cst_15 = arith.constant 2.000000e-01 : f32
      %18 = vector.broadcast %cst_15 : f32 to vector<256x128xf32>
      %19 = arith.mulf %18, %15 : vector<256x128xf32>
      %20 = arith.select %17, %15, %19 : vector<256x128xi1>, vector<256x128xf32>
      %c0_16 = arith.constant 0 : index
      %c0_17 = arith.constant 0 : index
      %21 = vector.load %arg5[%c0_16, %c0_17] : memref<256x128xf32, #tpu.memory_space<vmem>>, vector<256x128xf32>
      tpu.vector_store %arg5[%c0_16, %c0_17], %20 {strides = array<i32>} : memref<256x128xf32, #tpu.memory_space<vmem>>, vector<256x128xf32>,
    } else {
    }
    return
  }
  func.func @transform_0(%arg0: i32, %arg1: i32) -> (i32, i32) {
    %c0_i32 = arith.constant 0 : i32
    return %arg0, %arg1 : i32, i32
  }
  func.func @transform_1(%arg0: i32, %arg1: i32) -> (i32, i32) {
    %c0_i32 = arith.constant 0 : i32
    %c0_i32_0 = arith.constant 0 : i32
    return %arg1, %c0_i32 : i32, i32
  }
  func.func @transform_2(%arg0: i32, %arg1: i32) -> (i32, i32) {
    %c0_i32 = arith.constant 0 : i32
    %c0_i32_0 = arith.constant 0 : i32
    %c0_i32_1 = arith.constant 0 : i32
    return %c0_i32, %c0_i32_0 : i32, i32
  }
  func.func @transform_3(%arg0: i32, %arg1: i32) -> (i32, i32) {
    %c0_i32 = arith.constant 0 : i32
    %c0_i32_0 = arith.constant 0 : i32
    return %arg0, %c0_i32 : i32, i32
  }
}

module attributes {stable_mosaic.version = 11 : i64} {
  func.func @_conv_mm_kernel(%arg0: i32, %arg1: i32, %arg2: memref<128x512xbf16, #tpu.memory_space<vmem>>, %arg3: memref<512x128xbf16, #tpu.memory_space<vmem>>, %arg4: memref<1x128xf32, #tpu.memory_space<vmem>>, %arg5: memref<128x128xf32, #tpu.memory_space<vmem>>, %arg6: memref<128x128xf32, #tpu.memory_space<vmem>>) attributes {dimension_semantics = [#tpu.dimension_semantics<parallel>, #tpu.dimension_semantics<arbitrary>], iteration_bounds = array<i64: 1, 1>, scalar_prefetch = 0 : i64, scratch_operands = 1 : i64, tpu.core_type = #tpu.core_type<tc>, window_params = [{transform_indices = @transform_0, window_bounds = array<i64: 128, 512>}, {transform_indices = @transform_1, window_bounds = array<i64: 512, 128>}, {pipeline_mode = #tpu.pipeline_mode<synchronous>, transform_indices = @transform_2, window_bounds = array<i64: 1, 128>}, {transform_indices = @transform_3, window_bounds = array<i64: 128, 128>}]} {
    %c0_i32 = arith.constant 0 : i32
    %0 = arith.cmpi eq, %arg1, %c0_i32 : i32
    %1 = arith.extui %0 : i1 to i32
    %c0_i32_0 = arith.constant 0 : i32
    %2 = arith.cmpi ne, %1, %c0_i32_0 : i32
    scf.if %2 {
      %cst_10 = arith.constant 0.000000e+00 : f32
      %12 = vector.broadcast %cst_10 : f32 to vector<128x128xf32>
      %c0_11 = arith.constant 0 : index
      %c0_12 = arith.constant 0 : index
      %13 = vector.load %arg6[%c0_11, %c0_12] : memref<128x128xf32, #tpu.memory_space<vmem>>, vector<128x128xf32>
      tpu.vector_store %arg6[%c0_11, %c0_12], %12 {strides = array<i32>} : memref<128x128xf32, #tpu.memory_space<vmem>>, vector<128x128xf32>,
    } else {
    }
    %c0 = arith.constant 0 : index
    %c0_1 = arith.constant 0 : index
    %3 = vector.load %arg6[%c0, %c0_1] : memref<128x128xf32, #tpu.memory_space<vmem>>, vector<128x128xf32>
    %c0_2 = arith.constant 0 : index
    %c0_3 = arith.constant 0 : index
    %4 = vector.load %arg2[%c0_2, %c0_3] : memref<128x512xbf16, #tpu.memory_space<vmem>>, vector<128x512xbf16>
    %c0_4 = arith.constant 0 : index
    %c0_5 = arith.constant 0 : index
    %5 = vector.load %arg3[%c0_4, %c0_5] : memref<512x128xbf16, #tpu.memory_space<vmem>>, vector<512x128xbf16>
    %cst = arith.constant dense<0.000000e+00> : vector<128x128xf32>
    %6 = tpu.matmul %4, %5, %cst {dimension_numbers = #tpu.dot_dimension_numbers<[1], [0], [0], [1], [0, 0, 1, 1], [], []>} : vector<128x512xbf16>, vector<512x128xbf16>, vector<128x128xf32> -> vector<128x128xf32>
    %7 = arith.addf %3, %6 : vector<128x128xf32>
    %c0_6 = arith.constant 0 : index
    %c0_7 = arith.constant 0 : index
    %8 = vector.load %arg6[%c0_6, %c0_7] : memref<128x128xf32, #tpu.memory_space<vmem>>, vector<128x128xf32>
    tpu.vector_store %arg6[%c0_6, %c0_7], %7 {strides = array<i32>} : memref<128x128xf32, #tpu.memory_space<vmem>>, vector<128x128xf32>,
    %c0_i32_8 = arith.constant 0 : i32
    %9 = arith.cmpi eq, %arg1, %c0_i32_8 : i32
    %10 = arith.extui %9 : i1 to i32
    %c0_i32_9 = arith.constant 0 : i32
    %11 = arith.cmpi ne, %10, %c0_i32_9 : i32
    scf.if %11 {
      %c0_10 = arith.constant 0 : index
      %c0_11 = arith.constant 0 : index
      %12 = vector.load %arg6[%c0_10, %c0_11] : memref<128x128xf32, #tpu.memory_space<vmem>>, vector<128x128xf32>
      %c0_12 = arith.constant 0 : index
      %c0_13 = arith.constant 0 : index
      %13 = vector.load %arg4[%c0_12, %c0_13] : memref<1x128xf32, #tpu.memory_space<vmem>>, vector<1x128xf32>
      %14 = vector.broadcast %13 : vector<1x128xf32> to vector<128x128xf32>
      %15 = arith.addf %12, %14 : vector<128x128xf32>
      %cst_14 = arith.constant 0.000000e+00 : f32
      %16 = vector.broadcast %cst_14 : f32 to vector<128x128xf32>
      %17 = arith.cmpf oge, %15, %16 : vector<128x128xf32>
      %cst_15 = arith.constant 2.000000e-01 : f32
      %18 = vector.broadcast %cst_15 : f32 to vector<128x128xf32>
      %19 = arith.mulf %18, %15 : vector<128x128xf32>
      %20 = arith.select %17, %15, %19 : vector<128x128xi1>, vector<128x128xf32>
      %c0_16 = arith.constant 0 : index
      %c0_17 = arith.constant 0 : index
      %21 = vector.load %arg5[%c0_16, %c0_17] : memref<128x128xf32, #tpu.memory_space<vmem>>, vector<128x128xf32>
      tpu.vector_store %arg5[%c0_16, %c0_17], %20 {strides = array<i32>} : memref<128x128xf32, #tpu.memory_space<vmem>>, vector<128x128xf32>,
    } else {
    }
    return
  }
  func.func @transform_0(%arg0: i32, %arg1: i32) -> (i32, i32) {
    %c0_i32 = arith.constant 0 : i32
    return %arg0, %arg1 : i32, i32
  }
  func.func @transform_1(%arg0: i32, %arg1: i32) -> (i32, i32) {
    %c0_i32 = arith.constant 0 : i32
    %c0_i32_0 = arith.constant 0 : i32
    return %arg1, %c0_i32 : i32, i32
  }
  func.func @transform_2(%arg0: i32, %arg1: i32) -> (i32, i32) {
    %c0_i32 = arith.constant 0 : i32
    %c0_i32_0 = arith.constant 0 : i32
    %c0_i32_1 = arith.constant 0 : i32
    return %c0_i32, %c0_i32_0 : i32, i32
  }
  func.func @transform_3(%arg0: i32, %arg1: i32) -> (i32, i32) {
    %c0_i32 = arith.constant 0 : i32
    %c0_i32_0 = arith.constant 0 : i32
    return %arg0, %c0_i32 : i32, i32
  }
}

module attributes {stable_mosaic.version = 11 : i64} {
  func.func @_conv_mm_kernel(%arg0: i32, %arg1: i32, %arg2: memref<32x1024xbf16, #tpu.memory_space<vmem>>, %arg3: memref<1024x128xbf16, #tpu.memory_space<vmem>>, %arg4: memref<1x128xf32, #tpu.memory_space<vmem>>, %arg5: memref<32x128xf32, #tpu.memory_space<vmem>>, %arg6: memref<32x128xf32, #tpu.memory_space<vmem>>) attributes {dimension_semantics = [#tpu.dimension_semantics<parallel>, #tpu.dimension_semantics<arbitrary>], iteration_bounds = array<i64: 1, 1>, scalar_prefetch = 0 : i64, scratch_operands = 1 : i64, tpu.core_type = #tpu.core_type<tc>, window_params = [{transform_indices = @transform_0, window_bounds = array<i64: 32, 1024>}, {transform_indices = @transform_1, window_bounds = array<i64: 1024, 128>}, {pipeline_mode = #tpu.pipeline_mode<synchronous>, transform_indices = @transform_2, window_bounds = array<i64: 1, 128>}, {transform_indices = @transform_3, window_bounds = array<i64: 32, 128>}]} {
    %c0_i32 = arith.constant 0 : i32
    %0 = arith.cmpi eq, %arg1, %c0_i32 : i32
    %1 = arith.extui %0 : i1 to i32
    %c0_i32_0 = arith.constant 0 : i32
    %2 = arith.cmpi ne, %1, %c0_i32_0 : i32
    scf.if %2 {
      %cst_10 = arith.constant 0.000000e+00 : f32
      %12 = vector.broadcast %cst_10 : f32 to vector<32x128xf32>
      %c0_11 = arith.constant 0 : index
      %c0_12 = arith.constant 0 : index
      %13 = vector.load %arg6[%c0_11, %c0_12] : memref<32x128xf32, #tpu.memory_space<vmem>>, vector<32x128xf32>
      tpu.vector_store %arg6[%c0_11, %c0_12], %12 {strides = array<i32>} : memref<32x128xf32, #tpu.memory_space<vmem>>, vector<32x128xf32>,
    } else {
    }
    %c0 = arith.constant 0 : index
    %c0_1 = arith.constant 0 : index
    %3 = vector.load %arg6[%c0, %c0_1] : memref<32x128xf32, #tpu.memory_space<vmem>>, vector<32x128xf32>
    %c0_2 = arith.constant 0 : index
    %c0_3 = arith.constant 0 : index
    %4 = vector.load %arg2[%c0_2, %c0_3] : memref<32x1024xbf16, #tpu.memory_space<vmem>>, vector<32x1024xbf16>
    %c0_4 = arith.constant 0 : index
    %c0_5 = arith.constant 0 : index
    %5 = vector.load %arg3[%c0_4, %c0_5] : memref<1024x128xbf16, #tpu.memory_space<vmem>>, vector<1024x128xbf16>
    %cst = arith.constant dense<0.000000e+00> : vector<32x128xf32>
    %6 = tpu.matmul %4, %5, %cst {dimension_numbers = #tpu.dot_dimension_numbers<[1], [0], [0], [1], [0, 0, 1, 1], [], []>} : vector<32x1024xbf16>, vector<1024x128xbf16>, vector<32x128xf32> -> vector<32x128xf32>
    %7 = arith.addf %3, %6 : vector<32x128xf32>
    %c0_6 = arith.constant 0 : index
    %c0_7 = arith.constant 0 : index
    %8 = vector.load %arg6[%c0_6, %c0_7] : memref<32x128xf32, #tpu.memory_space<vmem>>, vector<32x128xf32>
    tpu.vector_store %arg6[%c0_6, %c0_7], %7 {strides = array<i32>} : memref<32x128xf32, #tpu.memory_space<vmem>>, vector<32x128xf32>,
    %c0_i32_8 = arith.constant 0 : i32
    %9 = arith.cmpi eq, %arg1, %c0_i32_8 : i32
    %10 = arith.extui %9 : i1 to i32
    %c0_i32_9 = arith.constant 0 : i32
    %11 = arith.cmpi ne, %10, %c0_i32_9 : i32
    scf.if %11 {
      %c0_10 = arith.constant 0 : index
      %c0_11 = arith.constant 0 : index
      %12 = vector.load %arg6[%c0_10, %c0_11] : memref<32x128xf32, #tpu.memory_space<vmem>>, vector<32x128xf32>
      %c0_12 = arith.constant 0 : index
      %c0_13 = arith.constant 0 : index
      %13 = vector.load %arg4[%c0_12, %c0_13] : memref<1x128xf32, #tpu.memory_space<vmem>>, vector<1x128xf32>
      %14 = vector.broadcast %13 : vector<1x128xf32> to vector<32x128xf32>
      %15 = arith.addf %12, %14 : vector<32x128xf32>
      %cst_14 = arith.constant 0.000000e+00 : f32
      %16 = vector.broadcast %cst_14 : f32 to vector<32x128xf32>
      %17 = arith.cmpf oge, %15, %16 : vector<32x128xf32>
      %cst_15 = arith.constant 2.000000e-01 : f32
      %18 = vector.broadcast %cst_15 : f32 to vector<32x128xf32>
      %19 = arith.mulf %18, %15 : vector<32x128xf32>
      %20 = arith.select %17, %15, %19 : vector<32x128xi1>, vector<32x128xf32>
      %c0_16 = arith.constant 0 : index
      %c0_17 = arith.constant 0 : index
      %21 = vector.load %arg5[%c0_16, %c0_17] : memref<32x128xf32, #tpu.memory_space<vmem>>, vector<32x128xf32>
      tpu.vector_store %arg5[%c0_16, %c0_17], %20 {strides = array<i32>} : memref<32x128xf32, #tpu.memory_space<vmem>>, vector<32x128xf32>,
    } else {
    }
    return
  }
  func.func @transform_0(%arg0: i32, %arg1: i32) -> (i32, i32) {
    %c0_i32 = arith.constant 0 : i32
    return %arg0, %arg1 : i32, i32
  }
  func.func @transform_1(%arg0: i32, %arg1: i32) -> (i32, i32) {
    %c0_i32 = arith.constant 0 : i32
    %c0_i32_0 = arith.constant 0 : i32
    return %arg1, %c0_i32 : i32, i32
  }
  func.func @transform_2(%arg0: i32, %arg1: i32) -> (i32, i32) {
    %c0_i32 = arith.constant 0 : i32
    %c0_i32_0 = arith.constant 0 : i32
    %c0_i32_1 = arith.constant 0 : i32
    return %c0_i32, %c0_i32_0 : i32, i32
  }
  func.func @transform_3(%arg0: i32, %arg1: i32) -> (i32, i32) {
    %c0_i32 = arith.constant 0 : i32
    %c0_i32_0 = arith.constant 0 : i32
    return %arg0, %c0_i32 : i32, i32
  }
}

module attributes {stable_mosaic.version = 11 : i64} {
  func.func @_conv_mm_kernel(%arg0: i32, %arg1: i32, %arg2: memref<16x1024xbf16, #tpu.memory_space<vmem>>, %arg3: memref<1024x256xbf16, #tpu.memory_space<vmem>>, %arg4: memref<1x256xf32, #tpu.memory_space<vmem>>, %arg5: memref<16x256xf32, #tpu.memory_space<vmem>>, %arg6: memref<16x256xf32, #tpu.memory_space<vmem>>) attributes {dimension_semantics = [#tpu.dimension_semantics<parallel>, #tpu.dimension_semantics<arbitrary>], iteration_bounds = array<i64: 1, 2>, scalar_prefetch = 0 : i64, scratch_operands = 1 : i64, tpu.core_type = #tpu.core_type<tc>, window_params = [{transform_indices = @transform_0, window_bounds = array<i64: 16, 1024>}, {transform_indices = @transform_1, window_bounds = array<i64: 1024, 256>}, {pipeline_mode = #tpu.pipeline_mode<synchronous>, transform_indices = @transform_2, window_bounds = array<i64: 1, 256>}, {transform_indices = @transform_3, window_bounds = array<i64: 16, 256>}]} {
    %c0_i32 = arith.constant 0 : i32
    %0 = arith.cmpi eq, %arg1, %c0_i32 : i32
    %1 = arith.extui %0 : i1 to i32
    %c0_i32_0 = arith.constant 0 : i32
    %2 = arith.cmpi ne, %1, %c0_i32_0 : i32
    scf.if %2 {
      %cst_9 = arith.constant 0.000000e+00 : f32
      %12 = vector.broadcast %cst_9 : f32 to vector<16x256xf32>
      %c0_10 = arith.constant 0 : index
      %c0_11 = arith.constant 0 : index
      %13 = vector.load %arg6[%c0_10, %c0_11] : memref<16x256xf32, #tpu.memory_space<vmem>>, vector<16x256xf32>
      tpu.vector_store %arg6[%c0_10, %c0_11], %12 {strides = array<i32>} : memref<16x256xf32, #tpu.memory_space<vmem>>, vector<16x256xf32>,
    } else {
    }
    %c0 = arith.constant 0 : index
    %c0_1 = arith.constant 0 : index
    %3 = vector.load %arg6[%c0, %c0_1] : memref<16x256xf32, #tpu.memory_space<vmem>>, vector<16x256xf32>
    %c0_2 = arith.constant 0 : index
    %c0_3 = arith.constant 0 : index
    %4 = vector.load %arg2[%c0_2, %c0_3] : memref<16x1024xbf16, #tpu.memory_space<vmem>>, vector<16x1024xbf16>
    %c0_4 = arith.constant 0 : index
    %c0_5 = arith.constant 0 : index
    %5 = vector.load %arg3[%c0_4, %c0_5] : memref<1024x256xbf16, #tpu.memory_space<vmem>>, vector<1024x256xbf16>
    %cst = arith.constant dense<0.000000e+00> : vector<16x256xf32>
    %6 = tpu.matmul %4, %5, %cst {dimension_numbers = #tpu.dot_dimension_numbers<[1], [0], [0], [1], [0, 0, 1, 1], [], []>} : vector<16x1024xbf16>, vector<1024x256xbf16>, vector<16x256xf32> -> vector<16x256xf32>
    %7 = arith.addf %3, %6 : vector<16x256xf32>
    %c0_6 = arith.constant 0 : index
    %c0_7 = arith.constant 0 : index
    %8 = vector.load %arg6[%c0_6, %c0_7] : memref<16x256xf32, #tpu.memory_space<vmem>>, vector<16x256xf32>
    tpu.vector_store %arg6[%c0_6, %c0_7], %7 {strides = array<i32>} : memref<16x256xf32, #tpu.memory_space<vmem>>, vector<16x256xf32>,
    %c1_i32 = arith.constant 1 : i32
    %9 = arith.cmpi eq, %arg1, %c1_i32 : i32
    %10 = arith.extui %9 : i1 to i32
    %c0_i32_8 = arith.constant 0 : i32
    %11 = arith.cmpi ne, %10, %c0_i32_8 : i32
    scf.if %11 {
      %c0_9 = arith.constant 0 : index
      %c0_10 = arith.constant 0 : index
      %12 = vector.load %arg6[%c0_9, %c0_10] : memref<16x256xf32, #tpu.memory_space<vmem>>, vector<16x256xf32>
      %c0_11 = arith.constant 0 : index
      %c0_12 = arith.constant 0 : index
      %13 = vector.load %arg4[%c0_11, %c0_12] : memref<1x256xf32, #tpu.memory_space<vmem>>, vector<1x256xf32>
      %14 = vector.broadcast %13 : vector<1x256xf32> to vector<16x256xf32>
      %15 = arith.addf %12, %14 : vector<16x256xf32>
      %cst_13 = arith.constant 0.000000e+00 : f32
      %16 = vector.broadcast %cst_13 : f32 to vector<16x256xf32>
      %17 = arith.cmpf oge, %15, %16 : vector<16x256xf32>
      %cst_14 = arith.constant 2.000000e-01 : f32
      %18 = vector.broadcast %cst_14 : f32 to vector<16x256xf32>
      %19 = arith.mulf %18, %15 : vector<16x256xf32>
      %20 = arith.select %17, %15, %19 : vector<16x256xi1>, vector<16x256xf32>
      %c0_15 = arith.constant 0 : index
      %c0_16 = arith.constant 0 : index
      %21 = vector.load %arg5[%c0_15, %c0_16] : memref<16x256xf32, #tpu.memory_space<vmem>>, vector<16x256xf32>
      tpu.vector_store %arg5[%c0_15, %c0_16], %20 {strides = array<i32>} : memref<16x256xf32, #tpu.memory_space<vmem>>, vector<16x256xf32>,
    } else {
    }
    return
  }
  func.func @transform_0(%arg0: i32, %arg1: i32) -> (i32, i32) {
    %c0_i32 = arith.constant 0 : i32
    return %arg0, %arg1 : i32, i32
  }
  func.func @transform_1(%arg0: i32, %arg1: i32) -> (i32, i32) {
    %c0_i32 = arith.constant 0 : i32
    %c0_i32_0 = arith.constant 0 : i32
    return %arg1, %c0_i32 : i32, i32
  }
  func.func @transform_2(%arg0: i32, %arg1: i32) -> (i32, i32) {
    %c0_i32 = arith.constant 0 : i32
    %c0_i32_0 = arith.constant 0 : i32
    %c0_i32_1 = arith.constant 0 : i32
    return %c0_i32, %c0_i32_0 : i32, i32
  }
  func.func @transform_3(%arg0: i32, %arg1: i32) -> (i32, i32) {
    %c0_i32 = arith.constant 0 : i32
    %c0_i32_0 = arith.constant 0 : i32
    return %arg0, %c0_i32 : i32, i32
  }
}

module attributes {stable_mosaic.version = 11 : i64} {
  func.func @_conv_mm_kernel(%arg0: i32, %arg1: i32, %arg2: memref<16x1024xbf16, #tpu.memory_space<vmem>>, %arg3: memref<1024x128xbf16, #tpu.memory_space<vmem>>, %arg4: memref<1x128xf32, #tpu.memory_space<vmem>>, %arg5: memref<16x128xf32, #tpu.memory_space<vmem>>, %arg6: memref<16x128xf32, #tpu.memory_space<vmem>>) attributes {dimension_semantics = [#tpu.dimension_semantics<parallel>, #tpu.dimension_semantics<arbitrary>], iteration_bounds = array<i64: 1, 4>, scalar_prefetch = 0 : i64, scratch_operands = 1 : i64, tpu.core_type = #tpu.core_type<tc>, window_params = [{transform_indices = @transform_0, window_bounds = array<i64: 16, 1024>}, {transform_indices = @transform_1, window_bounds = array<i64: 1024, 128>}, {pipeline_mode = #tpu.pipeline_mode<synchronous>, transform_indices = @transform_2, window_bounds = array<i64: 1, 128>}, {transform_indices = @transform_3, window_bounds = array<i64: 16, 128>}]} {
    %c0_i32 = arith.constant 0 : i32
    %0 = arith.cmpi eq, %arg1, %c0_i32 : i32
    %1 = arith.extui %0 : i1 to i32
    %c0_i32_0 = arith.constant 0 : i32
    %2 = arith.cmpi ne, %1, %c0_i32_0 : i32
    scf.if %2 {
      %cst_9 = arith.constant 0.000000e+00 : f32
      %12 = vector.broadcast %cst_9 : f32 to vector<16x128xf32>
      %c0_10 = arith.constant 0 : index
      %c0_11 = arith.constant 0 : index
      %13 = vector.load %arg6[%c0_10, %c0_11] : memref<16x128xf32, #tpu.memory_space<vmem>>, vector<16x128xf32>
      tpu.vector_store %arg6[%c0_10, %c0_11], %12 {strides = array<i32>} : memref<16x128xf32, #tpu.memory_space<vmem>>, vector<16x128xf32>,
    } else {
    }
    %c0 = arith.constant 0 : index
    %c0_1 = arith.constant 0 : index
    %3 = vector.load %arg6[%c0, %c0_1] : memref<16x128xf32, #tpu.memory_space<vmem>>, vector<16x128xf32>
    %c0_2 = arith.constant 0 : index
    %c0_3 = arith.constant 0 : index
    %4 = vector.load %arg2[%c0_2, %c0_3] : memref<16x1024xbf16, #tpu.memory_space<vmem>>, vector<16x1024xbf16>
    %c0_4 = arith.constant 0 : index
    %c0_5 = arith.constant 0 : index
    %5 = vector.load %arg3[%c0_4, %c0_5] : memref<1024x128xbf16, #tpu.memory_space<vmem>>, vector<1024x128xbf16>
    %cst = arith.constant dense<0.000000e+00> : vector<16x128xf32>
    %6 = tpu.matmul %4, %5, %cst {dimension_numbers = #tpu.dot_dimension_numbers<[1], [0], [0], [1], [0, 0, 1, 1], [], []>} : vector<16x1024xbf16>, vector<1024x128xbf16>, vector<16x128xf32> -> vector<16x128xf32>
    %7 = arith.addf %3, %6 : vector<16x128xf32>
    %c0_6 = arith.constant 0 : index
    %c0_7 = arith.constant 0 : index
    %8 = vector.load %arg6[%c0_6, %c0_7] : memref<16x128xf32, #tpu.memory_space<vmem>>, vector<16x128xf32>
    tpu.vector_store %arg6[%c0_6, %c0_7], %7 {strides = array<i32>} : memref<16x128xf32, #tpu.memory_space<vmem>>, vector<16x128xf32>,
    %c3_i32 = arith.constant 3 : i32
    %9 = arith.cmpi eq, %arg1, %c3_i32 : i32
    %10 = arith.extui %9 : i1 to i32
    %c0_i32_8 = arith.constant 0 : i32
    %11 = arith.cmpi ne, %10, %c0_i32_8 : i32
    scf.if %11 {
      %c0_9 = arith.constant 0 : index
      %c0_10 = arith.constant 0 : index
      %12 = vector.load %arg6[%c0_9, %c0_10] : memref<16x128xf32, #tpu.memory_space<vmem>>, vector<16x128xf32>
      %c0_11 = arith.constant 0 : index
      %c0_12 = arith.constant 0 : index
      %13 = vector.load %arg4[%c0_11, %c0_12] : memref<1x128xf32, #tpu.memory_space<vmem>>, vector<1x128xf32>
      %14 = vector.broadcast %13 : vector<1x128xf32> to vector<16x128xf32>
      %15 = arith.addf %12, %14 : vector<16x128xf32>
      %cst_13 = arith.constant 0.000000e+00 : f32
      %16 = vector.broadcast %cst_13 : f32 to vector<16x128xf32>
      %17 = arith.subf %16, %15 : vector<16x128xf32>
      %18 = math.exp %17 : vector<16x128xf32>
      %cst_14 = arith.constant 1.000000e+00 : f32
      %19 = vector.broadcast %cst_14 : f32 to vector<16x128xf32>
      %20 = arith.addf %19, %18 : vector<16x128xf32>
      %21 = tpu.reciprocal %20 {approx = true} : vector<16x128xf32> -> vector<16x128xf32>
      %c0_15 = arith.constant 0 : index
      %c0_16 = arith.constant 0 : index
      %22 = vector.load %arg5[%c0_15, %c0_16] : memref<16x128xf32, #tpu.memory_space<vmem>>, vector<16x128xf32>
      tpu.vector_store %arg5[%c0_15, %c0_16], %21 {strides = array<i32>} : memref<16x128xf32, #tpu.memory_space<vmem>>, vector<16x128xf32>,
    } else {
    }
    return
  }
  func.func @transform_0(%arg0: i32, %arg1: i32) -> (i32, i32) {
    %c0_i32 = arith.constant 0 : i32
    return %arg0, %arg1 : i32, i32
  }
  func.func @transform_1(%arg0: i32, %arg1: i32) -> (i32, i32) {
    %c0_i32 = arith.constant 0 : i32
    %c0_i32_0 = arith.constant 0 : i32
    return %arg1, %c0_i32 : i32, i32
  }
  func.func @transform_2(%arg0: i32, %arg1: i32) -> (i32, i32) {
    %c0_i32 = arith.constant 0 : i32
    %c0_i32_0 = arith.constant 0 : i32
    %c0_i32_1 = arith.constant 0 : i32
    return %c0_i32, %c0_i32_0 : i32, i32
  }
  func.func @transform_3(%arg0: i32, %arg1: i32) -> (i32, i32) {
    %c0_i32 = arith.constant 0 : i32
    %c0_i32_0 = arith.constant 0 : i32
    return %arg0, %c0_i32 : i32, i32
  }
}

</mosaic_0001>

<bundles_post_ra>
// kernel: _forward_impl.5
= control target key start
LH: loop header
LB: loop body
LE: loop exit
PB: predicated region body
PF: predicated region fallthrough
CT: control target
= control target key end

     0   :  { %s1207_s12 = smov 0   ;;  %s1209_s13 = smov 0   ;;  %s1357_s0 = inlined_call_operand.vmem [shape: bf16[512,128], index: 0, kind: input, shape index: {}]   ;;  %s1358_s1 = inlined_call_operand.vmem [shape: bf16[128,128], index: 1, kind: input, shape index: {}]   ;;  %s1359_s2 = inlined_call_operand.vmem [shape: f32[1,128], index: 2, kind: input, shape index: {}]   ;;  %s1360_s3 = inlined_call_operand.vmem [shape: f32[512,128], index: 3, kind: output, shape index: {}]  }
   0x1   :  { %s1211_s14 = smov 0  }
   0x2 LB: > { %s25_s15 = sadd.s32 1, %s1181_s13  ;;  %p995_p0 = scmp.ge.s32.totalorder %s1185_s14, 1  ;;  %s1185_s14 = sphi %s1211_s14, %s13_s14   ;;  %s1181_s13 = sphi %s1209_s13, %s1362_s13   ;;  %s1177_s12 = sphi %s1207_s12, %s1361_s12  }
   0x3   : > { %p27_p1 = scmp.ge.s32.totalorder %s25_s15, 2  ;;  %p166_p2 = scmp.lt.s32.totalorder %s1185_s14, 3 }
   0x5   : > { %s1364_s15 = smov (%p27_p1, %s25_s15), 0  ;;  %p167_p3 = pnand %p995_p0, %p166_p2 }
   0x6   : > { %s996_s18 = sshll.u32 (!%p167_p3), %s1177_s12, 5 }
   0x7   : > { %170 = sbr.rel (%p167_p3) target bundleno = 275 (0x113), region = 32  ;;  %p199_p4 = scmp.lt.s32.totalorder (!%p167_p3), %s996_s18, 63 }
   0xc   : > { %v1139_v0 = vld [vmem:[%s1358_s1 + $0x38] sm:$0xff]   ;;  %v1140_v1 = vld [vmem:[%s1358_s1 + $0x30] sm:$0xff]   ;;  %s1366_s18 = smov (!%p199_p4, %s996_s18), 63  ;;  %v1141_v2 = vld [vmem:[%s1358_s1 + $0x28] sm:$0xff]  }
   0xd   : > { %1051 = vmatprep.subr.bf16.mxu0 %v1139_v0  ;;  %1099 = vmatprep.subr.bf16.mxu1 %v1139_v0  ;;  %s997_s23 = sshll.u32 %s1366_s18, 2  ;;  %v1142_v3 = vld [vmem:[%s1358_s1 + $0x20] sm:$0xff]   ;;  %v1143_v6 = vld [vmem:[%s1358_s1 + $0x18] sm:$0xff]   ;;  %v1144_v7 = vld [vmem:[%s1358_s1 + $0x10] sm:$0xff]   ;;  %s999_s12 = sshll.u32 %s1366_s18, 3 }
   0xe   : > { %1052 = vmatpush3.bf16.msra.mxu0 %v1139_v0  ;;  %1107 = vmatpush3.bf16.msra.mxu1 %v1139_v0  ;;  %s1240_s26 = scalar_lea.vmem %s1357_s0, %s997_s23  ;;  %v1145_v8 = vld [vmem:[%s1358_s1 + $0x8] sm:$0xff]   ;;  %v1146_v9 = vld [vmem:[%s1358_s1] sm:$0xff]   ;;  %s1284_s19 = scalar_lea.vmem %s1360_s3, %s999_s12 }
   0xf   : > { %1053 = vmatprep.subr.bf16.mxu0 %v1140_v1  ;;  %1100 = vmatprep.subr.bf16.mxu1 %v1140_v1  ;;  %v1147_v4 = vld [vmem:[%s1240_s26] sm:$0xff]   ;;  %v1149_v10 = vld [vmem:[%s1240_s26 + $0x8] sm:$0xff]   ;;  %v1151_v12 = vld [vmem:[%s1240_s26 + $0x10] sm:$0xff]  }
  0x10   : > { %v1148_v5 = vld [vmem:[%s1240_s26 + $0x40] sm:$0xff]   ;;  %1067 = vmatprep.mubr.bf16.mxu0 %v1147_v4  ;;  %v1150_v11 = vld [vmem:[%s1240_s26 + $0x48] sm:$0xff]   ;;  %v1152_v13 = vld [vmem:[%s1240_s26 + $0x50] sm:$0xff]  }
  0x11   : > { %1083 = vmatprep.mubr.bf16.mxu1 %v1148_v5  ;;  %v1153_v14 = vld [vmem:[%s1240_s26 + $0x18] sm:$0xff]   ;;  %v1155_v16 = vld [vmem:[%s1240_s26 + $0x20] sm:$0xff]   ;;  %v1157_v18 = vld [vmem:[%s1240_s26 + $0x28] sm:$0xff]  }
  0x12   : > { %1054 = vmatpush3.bf16.msra.mxu0 %v1140_v1  ;;  %1108 = vmatpush3.bf16.msra.mxu1 %v1140_v1  ;;  %v1154_v15 = vld [vmem:[%s1240_s26 + $0x58] sm:$0xff]   ;;  %v1156_v17 = vld [vmem:[%s1240_s26 + $0x60] sm:$0xff]   ;;  %v1158_v19 = vld [vmem:[%s1240_s26 + $0x68] sm:$0xff]  }
  0x13   : > { %1055 = vmatprep.subr.bf16.mxu0 %v1141_v2  ;;  %1101 = vmatprep.subr.bf16.mxu1 %v1141_v2  ;;  %v1159_v20 = vld [vmem:[%s1240_s26 + $0x30] sm:$0xff]   ;;  %v1161_v22 = vld [vmem:[%s1240_s26 + $0x38] sm:$0xff]   ;;  %v1276_v24 = vld [vmem:[%s1359_s2] ss:$0 sm:$0xff] }
  0x14   : > { %v1160_v21 = vld [vmem:[%s1240_s26 + $0x70] sm:$0xff]   ;;  %v1162_v23 = vld [vmem:[%s1240_s26 + $0x78] sm:$0xff]  }
  0x16   : > { %1056 = vmatpush3.bf16.msra.mxu0 %v1141_v2  ;;  %1109 = vmatpush3.bf16.msra.mxu1 %v1141_v2 }
  0x17   : > { %1057 = vmatprep.subr.bf16.mxu0 %v1142_v3  ;;  %1102 = vmatprep.subr.bf16.mxu1 %v1142_v3 }
  0x1a   : > { %1058 = vmatpush3.bf16.msra.mxu0 %v1142_v3  ;;  %1110 = vmatpush3.bf16.msra.mxu1 %v1142_v3 }
  0x1b   : > { %1059 = vmatprep.subr.bf16.mxu0 %v1143_v6  ;;  %1103 = vmatprep.subr.bf16.mxu1 %v1143_v6 }
  0x1e   : > { %1060 = vmatpush3.bf16.msra.mxu0 %v1143_v6  ;;  %1111 = vmatpush3.bf16.msra.mxu1 %v1143_v6 }
  0x1f   : > { %1061 = vmatprep.subr.bf16.mxu0 %v1144_v7  ;;  %1104 = vmatprep.subr.bf16.mxu1 %v1144_v7 }
  0x22   : > { %1062 = vmatpush3.bf16.msra.mxu0 %v1144_v7  ;;  %1112 = vmatpush3.bf16.msra.mxu1 %v1144_v7 }
  0x23   : > { %1063 = vmatprep.subr.bf16.mxu0 %v1145_v8  ;;  %1105 = vmatprep.subr.bf16.mxu1 %v1145_v8 }
  0x26   : > { %1064 = vmatpush3.bf16.msra.mxu0 %v1145_v8  ;;  %1113 = vmatpush3.bf16.msra.mxu1 %v1145_v8 }
  0x27   : > { %1065 = vmatprep.subr.bf16.mxu0 %v1146_v9  ;;  %1106 = vmatprep.subr.bf16.mxu1 %v1146_v9 }
  0x2a   : > { %1066 = vmatpush3.bf16.msra.mxu0 %v1146_v9  ;;  %1114 = vmatpush3.bf16.msra.mxu1 %v1146_v9 }
  0x2d   : > { %1068 = vmatmul.mubr.bf16.vlgmr.msra.gmra.mxu0 %v1149_v10  ;;  %1084 = vmatmul.mubr.bf16.vlgmr.msra.gmra.mxu1 %v1150_v11 }
  0x2e   : > { %1071 = vmatprep.mubr.bf16.mxu0 %v1151_v12  ;;  %1087 = vmatprep.mubr.bf16.mxu1 %v1152_v13 }
  0x35   : > { %1072 = vmatmul.mubr.bf16.gmra.mxu0 %v1153_v14  ;;  %1088 = vmatmul.mubr.bf16.gmra.mxu1 %v1154_v15 }
  0x36   : > { %1075 = vmatprep.mubr.bf16.mxu0 %v1155_v16  ;;  %1091 = vmatprep.mubr.bf16.mxu1 %v1156_v17 }
  0x3d   : > { %1076 = vmatmul.mubr.bf16.gmra.mxu0 %v1157_v18  ;;  %1092 = vmatmul.mubr.bf16.gmra.mxu1 %v1158_v19 }
  0x3e   : > { %1079 = vmatprep.mubr.bf16.mxu0 %v1159_v20  ;;  %1095 = vmatprep.mubr.bf16.mxu1 %v1160_v21 }
  0x45   : > { %1080 = vmatmul.mubr.bf16.gmra.mxu0 %v1161_v22  ;;  %1096 = vmatmul.mubr.bf16.gmra.mxu1 %v1162_v23 }
  0xed   : > { %v1069_v25 = vpop.f32.mrf.mxu0  ;;  %v1085_v26 = vpop.f32.mrf.mxu1 }
  0xee   : > { %v749_v27 = vadd.f32 %v1069_v25, %v1276_v24  ;;  %v765_v28 = vadd.f32 %v1085_v26, %v1276_v24 }
  0xef   : > { %v514_v29 = vpop.f32.mrf.mxu0  ;;  %v578_v30 = vpop.f32.mrf.mxu1 }
  0xf0   : > { %vm781_vm0 = vcmp.ge.f32.partialorder %v749_v27, 0.0  ;;  %v813_v31 = vmul.f32 0.2, %v749_v27  ;;  %vm797_vm1 = vcmp.ge.f32.partialorder %v765_v28, 0.0  ;;  %v829_v32 = vmul.f32 0.2, %v765_v28 }
  0xf1   : > { %v747_v33 = vadd.f32 %v1276_v24, %v514_v29  ;;  %v763_v34 = vadd.f32 %v1276_v24, %v578_v30  ;;  %v1070_v35 = vpop.f32.mrf.mxu0  ;;  %v1086_v36 = vpop.f32.mrf.mxu1 }
  0xf2   : > { %v845_v37 = vsel %vm781_vm0, %v749_v27, %v813_v31  ;;  %v861_v38 = vsel %vm797_vm1, %v765_v28, %v829_v32  ;;  %v750_v39 = vadd.f32 %v1070_v35, %v1276_v24  ;;  %v766_v40 = vadd.f32 %v1086_v36, %v1276_v24 }
  0xf3   : > { %877 = vst [vmem:[%s1284_s19 + $0x10] sm:$0xff] %v845_v37  ;;  %893 = vst [vmem:[%s1284_s19 + $0x90] sm:$0xff] %v861_v38  ;;  %vm779_vm2 = vcmp.ge.f32.partialorder %v747_v33, 0.0  ;;  %v811_v41 = vmul.f32 0.2, %v747_v33  ;;  %vm795_vm3 = vcmp.ge.f32.partialorder %v763_v34, 0.0  ;;  %v517_v43 = vpop.f32.mrf.mxu0  ;;  %v581_v44 = vpop.f32.mrf.mxu1 }
  0xf4   : > { %v827_v42 = vmul.f32 0.2, %v763_v34  ;;  %vm782_vm4 = vcmp.ge.f32.partialorder %v750_v39, 0.0  ;;  %v814_v45 = vmul.f32 0.2, %v750_v39  ;;  %vm798_vm5 = vcmp.ge.f32.partialorder %v766_v40, 0.0 }
  0xf5   : > { %v830_v46 = vmul.f32 0.2, %v766_v40  ;;  %v843_v47 = vsel %vm779_vm2, %v747_v33, %v811_v41  ;;  %v748_v49 = vadd.f32 %v1276_v24, %v517_v43  ;;  %v764_v50 = vadd.f32 %v1276_v24, %v581_v44  ;;  %v1073_v51 = vpop.f32.mrf.mxu0  ;;  %v1089_v52 = vpop.f32.mrf.mxu1 }
  0xf6   : > { %v859_v48 = vsel %vm795_vm3, %v763_v34, %v827_v42  ;;  %875 = vst [vmem:[%s1284_s19] sm:$0xff] %v843_v47  ;;  %v846_v53 = vsel %vm782_vm4, %v750_v39, %v814_v45  ;;  %v753_v55 = vadd.f32 %v1073_v51, %v1276_v24  ;;  %v769_v56 = vadd.f32 %v1089_v52, %v1276_v24 }
  0xf7   : > { %891 = vst [vmem:[%s1284_s19 + $0x80] sm:$0xff] %v859_v48  ;;  %v862_v54 = vsel %vm798_vm5, %v766_v40, %v830_v46  ;;  %878 = vst [vmem:[%s1284_s19 + $0x18] sm:$0xff] %v846_v53  ;;  %vm780_vm6 = vcmp.ge.f32.partialorder %v748_v49, 0.0  ;;  %v812_v57 = vmul.f32 0.2, %v748_v49  ;;  %vm796_vm7 = vcmp.ge.f32.partialorder %v764_v50, 0.0  ;;  %v530_v59 = vpop.f32.mrf.mxu0  ;;  %v594_v60 = vpop.f32.mrf.mxu1 }
  0xf8   : > { %894 = vst [vmem:[%s1284_s19 + $0x98] sm:$0xff] %v862_v54  ;;  %v828_v58 = vmul.f32 0.2, %v764_v50  ;;  %vm785_vm8 = vcmp.ge.f32.partialorder %v753_v55, 0.0  ;;  %v817_v61 = vmul.f32 0.2, %v753_v55  ;;  %v751_v1 = vadd.f32 %v1276_v24, %v530_v59 }
  0xf9   : > { %vm801_vm9 = vcmp.ge.f32.partialorder %v769_v56, 0.0  ;;  %v833_v62 = vmul.f32 0.2, %v769_v56  ;;  %v844_v63 = vsel %vm780_vm6, %v748_v49, %v812_v57  ;;  %v767_v2 = vadd.f32 %v1276_v24, %v594_v60  ;;  %v1074_v3 = vpop.f32.mrf.mxu0  ;;  %v1090_v4 = vpop.f32.mrf.mxu1 }
  0xfa   : > { %v860_v0 = vsel %vm796_vm7, %v764_v50, %v828_v58  ;;  %876 = vst [vmem:[%s1284_s19 + $0x8] sm:$0xff] %v844_v63  ;;  %v849_v5 = vsel %vm785_vm8, %v753_v55, %v817_v61  ;;  %v754_v7 = vadd.f32 %v1074_v3, %v1276_v24  ;;  %v770_v8 = vadd.f32 %v1090_v4, %v1276_v24 }
  0xfb   : > { %892 = vst [vmem:[%s1284_s19 + $0x88] sm:$0xff] %v860_v0  ;;  %v865_v6 = vsel %vm801_vm9, %v769_v56, %v833_v62  ;;  %881 = vst [vmem:[%s1284_s19 + $0x30] sm:$0xff] %v849_v5  ;;  %vm783_vm10 = vcmp.ge.f32.partialorder %v751_v1, 0.0  ;;  %v815_v9 = vmul.f32 0.2, %v751_v1  ;;  %vm799_vm11 = vcmp.ge.f32.partialorder %v767_v2, 0.0  ;;  %v533_v11 = vpop.f32.mrf.mxu0  ;;  %v597_v12 = vpop.f32.mrf.mxu1 }
  0xfc   : > { %897 = vst [vmem:[%s1284_s19 + $0xb0] sm:$0xff] %v865_v6  ;;  %v831_v10 = vmul.f32 0.2, %v767_v2  ;;  %vm786_vm12 = vcmp.ge.f32.partialorder %v754_v7, 0.0  ;;  %v818_v13 = vmul.f32 0.2, %v754_v7  ;;  %v752_v17 = vadd.f32 %v1276_v24, %v533_v11 }
  0xfd   : > { %vm802_vm13 = vcmp.ge.f32.partialorder %v770_v8, 0.0  ;;  %v834_v14 = vmul.f32 0.2, %v770_v8  ;;  %v847_v15 = vsel %vm783_vm10, %v751_v1, %v815_v9  ;;  %v768_v18 = vadd.f32 %v1276_v24, %v597_v12  ;;  %v1077_v19 = vpop.f32.mrf.mxu0  ;;  %v1093_v20 = vpop.f32.mrf.mxu1 }
  0xfe   : > { %v863_v16 = vsel %vm799_vm11, %v767_v2, %v831_v10  ;;  %879 = vst [vmem:[%s1284_s19 + $0x20] sm:$0xff] %v847_v15  ;;  %v850_v21 = vsel %vm786_vm12, %v754_v7, %v818_v13  ;;  %v757_v23 = vadd.f32 %v1077_v19, %v1276_v24  ;;  %v773_v25 = vadd.f32 %v1093_v20, %v1276_v24 }
  0xff   : > { %895 = vst [vmem:[%s1284_s19 + $0xa0] sm:$0xff] %v863_v16  ;;  %v866_v22 = vsel %vm802_vm13, %v770_v8, %v834_v14  ;;  %882 = vst [vmem:[%s1284_s19 + $0x38] sm:$0xff] %v850_v21  ;;  %vm784_vm14 = vcmp.ge.f32.partialorder %v752_v17, 0.0  ;;  %v816_v26 = vmul.f32 0.2, %v752_v17  ;;  %vm800_vm15 = vcmp.ge.f32.partialorder %v768_v18, 0.0  ;;  %v546_v28 = vpop.f32.mrf.mxu0  ;;  %v610_v29 = vpop.f32.mrf.mxu1 }
 0x100   : > { %898 = vst [vmem:[%s1284_s19 + $0xb8] sm:$0xff] %v866_v22  ;;  %v832_v27 = vmul.f32 0.2, %v768_v18  ;;  %vm789_vm0 = vcmp.ge.f32.partialorder %v757_v23, 0.0  ;;  %v821_v30 = vmul.f32 0.2, %v757_v23  ;;  %v755_v34 = vadd.f32 %v1276_v24, %v546_v28 }
 0x101   : > { %vm805_vm1 = vcmp.ge.f32.partialorder %v773_v25, 0.0  ;;  %v837_v31 = vmul.f32 0.2, %v773_v25  ;;  %v848_v32 = vsel %vm784_vm14, %v752_v17, %v816_v26  ;;  %v771_v35 = vadd.f32 %v1276_v24, %v610_v29  ;;  %v1078_v36 = vpop.f32.mrf.mxu0  ;;  %v1094_v37 = vpop.f32.mrf.mxu1 }
 0x102   : > { %v864_v33 = vsel %vm800_vm15, %v768_v18, %v832_v27  ;;  %880 = vst [vmem:[%s1284_s19 + $0x28] sm:$0xff] %v848_v32  ;;  %v853_v38 = vsel %vm789_vm0, %v757_v23, %v821_v30  ;;  %v758_v40 = vadd.f32 %v1078_v36, %v1276_v24  ;;  %v774_v41 = vadd.f32 %v1094_v37, %v1276_v24 }
 0x103   : > { %896 = vst [vmem:[%s1284_s19 + $0xa8] sm:$0xff] %v864_v33  ;;  %v869_v39 = vsel %vm805_vm1, %v773_v25, %v837_v31  ;;  %885 = vst [vmem:[%s1284_s19 + $0x50] sm:$0xff] %v853_v38  ;;  %vm787_vm2 = vcmp.ge.f32.partialorder %v755_v34, 0.0  ;;  %v819_v42 = vmul.f32 0.2, %v755_v34  ;;  %vm803_vm3 = vcmp.ge.f32.partialorder %v771_v35, 0.0  ;;  %v549_v44 = vpop.f32.mrf.mxu0  ;;  %v613_v45 = vpop.f32.mrf.mxu1 }
 0x104   : > { %901 = vst [vmem:[%s1284_s19 + $0xd0] sm:$0xff] %v869_v39  ;;  %v835_v43 = vmul.f32 0.2, %v771_v35  ;;  %vm790_vm4 = vcmp.ge.f32.partialorder %v758_v40, 0.0  ;;  %v822_v46 = vmul.f32 0.2, %v758_v40  ;;  %v756_v50 = vadd.f32 %v1276_v24, %v549_v44 }
 0x105   : > { %vm806_vm5 = vcmp.ge.f32.partialorder %v774_v41, 0.0  ;;  %v838_v47 = vmul.f32 0.2, %v774_v41  ;;  %v851_v48 = vsel %vm787_vm2, %v755_v34, %v819_v42  ;;  %v772_v51 = vadd.f32 %v1276_v24, %v613_v45  ;;  %v1081_v52 = vpop.f32.mrf.mxu0  ;;  %v1097_v53 = vpop.f32.mrf.mxu1 }
 0x106   : > { %v867_v49 = vsel %vm803_vm3, %v771_v35, %v835_v43  ;;  %883 = vst [vmem:[%s1284_s19 + $0x40] sm:$0xff] %v851_v48  ;;  %v854_v54 = vsel %vm790_vm4, %v758_v40, %v822_v46  ;;  %v761_v56 = vadd.f32 %v1081_v52, %v1276_v24  ;;  %v777_v57 = vadd.f32 %v1097_v53, %v1276_v24 }
 0x107   : > { %899 = vst [vmem:[%s1284_s19 + $0xc0] sm:$0xff] %v867_v49  ;;  %v870_v55 = vsel %vm806_vm5, %v774_v41, %v838_v47  ;;  %886 = vst [vmem:[%s1284_s19 + $0x58] sm:$0xff] %v854_v54  ;;  %vm788_vm6 = vcmp.ge.f32.partialorder %v756_v50, 0.0  ;;  %v820_v58 = vmul.f32 0.2, %v756_v50  ;;  %vm804_vm7 = vcmp.ge.f32.partialorder %v772_v51, 0.0  ;;  %v562_v60 = vpop.f32.mrf.mxu0  ;;  %v626_v61 = vpop.f32.mrf.mxu1 }
 0x108   : > { %902 = vst [vmem:[%s1284_s19 + $0xd8] sm:$0xff] %v870_v55  ;;  %v836_v59 = vmul.f32 0.2, %v772_v51  ;;  %vm793_vm8 = vcmp.ge.f32.partialorder %v761_v56, 0.0  ;;  %v825_v62 = vmul.f32 0.2, %v761_v56  ;;  %v759_v2 = vadd.f32 %v1276_v24, %v562_v60 }
 0x109   : > { %vm809_vm9 = vcmp.ge.f32.partialorder %v777_v57, 0.0  ;;  %v841_v63 = vmul.f32 0.2, %v777_v57  ;;  %v852_v0 = vsel %vm788_vm6, %v756_v50, %v820_v58  ;;  %v775_v3 = vadd.f32 %v1276_v24, %v626_v61  ;;  %v1082_v4 = vpop.f32.mrf.mxu0  ;;  %v1098_v5 = vpop.f32.mrf.mxu1 }
 0x10a   : > { %v868_v1 = vsel %vm804_vm7, %v772_v51, %v836_v59  ;;  %884 = vst [vmem:[%s1284_s19 + $0x48] sm:$0xff] %v852_v0  ;;  %v857_v6 = vsel %vm793_vm8, %v761_v56, %v825_v62  ;;  %v762_v8 = vadd.f32 %v1082_v4, %v1276_v24  ;;  %v778_v9 = vadd.f32 %v1098_v5, %v1276_v24 }
 0x10b   : > { %900 = vst [vmem:[%s1284_s19 + $0xc8] sm:$0xff] %v868_v1  ;;  %v873_v7 = vsel %vm809_vm9, %v777_v57, %v841_v63  ;;  %889 = vst [vmem:[%s1284_s19 + $0x70] sm:$0xff] %v857_v6  ;;  %vm791_vm10 = vcmp.ge.f32.partialorder %v759_v2, 0.0  ;;  %v823_v10 = vmul.f32 0.2, %v759_v2  ;;  %vm807_vm11 = vcmp.ge.f32.partialorder %v775_v3, 0.0  ;;  %v565_v12 = vpop.f32.mrf.mxu0  ;;  %v629_v13 = vpop.f32.mrf.mxu1 }
 0x10c   : > { %905 = vst [vmem:[%s1284_s19 + $0xf0] sm:$0xff] %v873_v7  ;;  %v839_v11 = vmul.f32 0.2, %v775_v3  ;;  %vm794_vm12 = vcmp.ge.f32.partialorder %v762_v8, 0.0  ;;  %v826_v14 = vmul.f32 0.2, %v762_v8  ;;  %v760_v18 = vadd.f32 %v1276_v24, %v565_v12 }
 0x10d   : > { %vm810_vm13 = vcmp.ge.f32.partialorder %v778_v9, 0.0  ;;  %v842_v15 = vmul.f32 0.2, %v778_v9  ;;  %v855_v16 = vsel %vm791_vm10, %v759_v2, %v823_v10  ;;  %v776_v19 = vadd.f32 %v1276_v24, %v629_v13 }
 0x10e   : > { %v871_v17 = vsel %vm807_vm11, %v775_v3, %v839_v11  ;;  %887 = vst [vmem:[%s1284_s19 + $0x60] sm:$0xff] %v855_v16  ;;  %v858_v20 = vsel %vm794_vm12, %v762_v8, %v826_v14  ;;  %vm792_vm14 = vcmp.ge.f32.partialorder %v760_v18, 0.0  ;;  %v824_v22 = vmul.f32 0.2, %v760_v18 }
 0x10f   : > { %903 = vst [vmem:[%s1284_s19 + $0xe0] sm:$0xff] %v871_v17  ;;  %v874_v21 = vsel %vm810_vm13, %v778_v9, %v842_v15  ;;  %890 = vst [vmem:[%s1284_s19 + $0x78] sm:$0xff] %v858_v20  ;;  %vm808_vm15 = vcmp.ge.f32.partialorder %v776_v19, 0.0  ;;  %v840_v23 = vmul.f32 0.2, %v776_v19 }
 0x110   : > { %906 = vst [vmem:[%s1284_s19 + $0xf8] sm:$0xff] %v874_v21  ;;  %v856_v25 = vsel %vm792_vm14, %v760_v18, %v824_v22 }
 0x111   : > { %v872_v26 = vsel %vm808_vm15, %v776_v19, %v840_v23  ;;  %888 = vst [vmem:[%s1284_s19 + $0x68] sm:$0xff] %v856_v25 }
 0x112   : > { %904 = vst [vmem:[%s1284_s19 + $0xe8] sm:$0xff] %v872_v26 }
 0x113 PF: > { %s13_s14 = sadd.s32 1, %s1185_s14   ;;  %s1361_s12 = smov %s1181_s13 }
 0x114   : > { %p10_p5 = scmp.ge.s32.totalorder %s13_s14, 4   ;;  %s1362_s13 = smov %s1364_s15 }
 0x116   :  { %12 = sbr.rel (!%p10_p5) target bundleno = 2 (0x2), region = 73 }

// kernel: _forward_impl.6
= control target key start
LH: loop header
LB: loop body
LE: loop exit
PB: predicated region body
PF: predicated region fallthrough
CT: control target
= control target key end

     0   :  { %s1389_s1 = inlined_call_operand.vmem [shape: bf16[512,128], index: 1, kind: input, shape index: {}]   ;;  %s1390_s0 = inlined_call_operand.vmem [shape: bf16[128,512], index: 0, kind: input, shape index: {}]   ;;  %s1391_s2 = inlined_call_operand.vmem [shape: f32[1,128], index: 2, kind: input, shape index: {}]   ;;  %s1392_s3 = inlined_call_operand.vmem [shape: f32[128,128], index: 3, kind: output, shape index: {}]  }
   0x1   :  { %v1028_v0 = vld [vmem:[%s1389_s1 + $0x78] sm:$0xff]   ;;  %v1032_v4 = vld [vmem:[%s1389_s1 + $0x70] sm:$0xff]   ;;  %v1036_v8 = vld [vmem:[%s1389_s1 + $0x68] sm:$0xff]  }
   0x2   :  { %v1029_v1 = vld [vmem:[%s1389_s1 + $0xf8] sm:$0xff]   ;;  %900 = vmatprep.subr.bf16.mxu0 %v1028_v0  ;;  %v1033_v5 = vld [vmem:[%s1389_s1 + $0xf0] sm:$0xff]   ;;  %v1037_v9 = vld [vmem:[%s1389_s1 + $0xe8] sm:$0xff]  }
   0x3   :  { %v1030_v2 = vld [vmem:[%s1389_s1 + $0x38] sm:$0xff]   ;;  %964 = vmatprep.subr.bf16.mxu1 %v1029_v1  ;;  %v1034_v6 = vld [vmem:[%s1389_s1 + $0x30] sm:$0xff]   ;;  %v1038_v10 = vld [vmem:[%s1389_s1 + $0x28] sm:$0xff]  }
   0x4   :  { %v1031_v3 = vld [vmem:[%s1389_s1 + $0xb8] sm:$0xff]   ;;  %901 = vmatpush3.bf16.msra.mxu0 %v1030_v2  ;;  %v1035_v7 = vld [vmem:[%s1389_s1 + $0xb0] sm:$0xff]   ;;  %v1039_v11 = vld [vmem:[%s1389_s1 + $0xa8] sm:$0xff]  }
   0x5   :  { %965 = vmatpush3.bf16.msra.mxu1 %v1031_v3  ;;  %902 = vmatprep.subr.bf16.mxu0 %v1032_v4  ;;  %v1040_v12 = vld [vmem:[%s1389_s1 + $0x60] sm:$0xff]   ;;  %v1044_v16 = vld [vmem:[%s1389_s1 + $0x58] sm:$0xff]   ;;  %v1048_v20 = vld [vmem:[%s1389_s1 + $0x50] sm:$0xff]  }
   0x6   :  { %966 = vmatprep.subr.bf16.mxu1 %v1033_v5  ;;  %v1041_v13 = vld [vmem:[%s1389_s1 + $0xe0] sm:$0xff]   ;;  %v1045_v17 = vld [vmem:[%s1389_s1 + $0xd8] sm:$0xff]   ;;  %v1049_v21 = vld [vmem:[%s1389_s1 + $0xd0] sm:$0xff]  }
   0x7   :  { %v1042_v14 = vld [vmem:[%s1389_s1 + $0x20] sm:$0xff]   ;;  %v1046_v18 = vld [vmem:[%s1389_s1 + $0x18] sm:$0xff]   ;;  %v1050_v22 = vld [vmem:[%s1389_s1 + $0x10] sm:$0xff]  }
   0x8   :  { %903 = vmatpush3.bf16.msra.mxu0 %v1034_v6  ;;  %v1043_v15 = vld [vmem:[%s1389_s1 + $0xa0] sm:$0xff]   ;;  %v1047_v19 = vld [vmem:[%s1389_s1 + $0x98] sm:$0xff]   ;;  %v1051_v23 = vld [vmem:[%s1389_s1 + $0x90] sm:$0xff]  }
   0x9   :  { %967 = vmatpush3.bf16.msra.mxu1 %v1035_v7  ;;  %904 = vmatprep.subr.bf16.mxu0 %v1036_v8  ;;  %v1052_v24 = vld [vmem:[%s1389_s1 + $0x48] sm:$0xff]   ;;  %v1056_v28 = vld [vmem:[%s1389_s1 + $0x40] sm:$0xff]  }
   0xa   :  { %968 = vmatprep.subr.bf16.mxu1 %v1037_v9  ;;  %v1053_v25 = vld [vmem:[%s1389_s1 + $0xc8] sm:$0xff]   ;;  %v1057_v29 = vld [vmem:[%s1389_s1 + $0xc0] sm:$0xff]  }
   0xb   :  { %v1054_v26 = vld [vmem:[%s1389_s1 + $0x8] sm:$0xff]   ;;  %v1058_v30 = vld [vmem:[%s1389_s1] sm:$0xff]  }
   0xc   :  { %905 = vmatpush3.bf16.msra.mxu0 %v1038_v10  ;;  %v1055_v27 = vld [vmem:[%s1389_s1 + $0x88] sm:$0xff]   ;;  %v1059_v31 = vld [vmem:[%s1389_s1 + $0x80] sm:$0xff]  }
   0xd   :  { %969 = vmatpush3.bf16.msra.mxu1 %v1039_v11  ;;  %906 = vmatprep.subr.bf16.mxu0 %v1040_v12  ;;  %v1060_v32 = vld [vmem:[%s1390_s0] ss:$16 sps:$4 sm:$0xff]   ;;  %v1062_v33 = vld [vmem:[%s1390_s0 + $0x4] ss:$16 sps:$4 sm:$0xff]   ;;  %v1063_v34 = vld [vmem:[%s1390_s0 + $0x8] ss:$16 sps:$4 sm:$0xff]  }
   0xe   :  { %970 = vmatprep.subr.bf16.mxu1 %v1041_v13  ;;  %v1065_v35 = vld [vmem:[%s1390_s0 + $0xc] ss:$16 sps:$4 sm:$0xff]   ;;  %531 = vmatprep.mubr.bf16.mxu0 %v1062_v33  ;;  %v1066_v36 = vld [vmem:[%s1390_s0 + $0x24] ss:$16 sps:$4 sm:$0xff]   ;;  %v1070_v38 = vld [vmem:[%s1390_s0 + $0x20] ss:$16 sps:$4 sm:$0xff]  }
   0xf   :  { %628 = vmatprep.mubr.bf16.mxu1 %v1065_v35  ;;  %v1068_v37 = vld [vmem:[%s1390_s0 + $0x2c] ss:$16 sps:$4 sm:$0xff]   ;;  %v1071_v39 = vld [vmem:[%s1390_s0 + $0x28] ss:$16 sps:$4 sm:$0xff]   ;;  %v1072_v40 = vld [vmem:[%s1390_s0 + $0x44] ss:$16 sps:$4 sm:$0xff]  }
  0x10   :  { %907 = vmatpush3.bf16.msra.mxu0 %v1042_v14  ;;  %v1074_v41 = vld [vmem:[%s1390_s0 + $0x4c] ss:$16 sps:$4 sm:$0xff]   ;;  %v1076_v42 = vld [vmem:[%s1390_s0 + $0x40] ss:$16 sps:$4 sm:$0xff]   ;;  %v1077_v43 = vld [vmem:[%s1390_s0 + $0x48] ss:$16 sps:$4 sm:$0xff]  }
  0x11   :  { %971 = vmatpush3.bf16.msra.mxu1 %v1043_v15  ;;  %908 = vmatprep.subr.bf16.mxu0 %v1044_v16  ;;  %v1078_v44 = vld [vmem:[%s1390_s0 + $0x64] ss:$16 sps:$4 sm:$0xff]   ;;  %v1080_v45 = vld [vmem:[%s1390_s0 + $0x6c] ss:$16 sps:$4 sm:$0xff]   ;;  %v1082_v46 = vld [vmem:[%s1390_s0 + $0x60] ss:$16 sps:$4 sm:$0xff]  }
  0x12   :  { %972 = vmatprep.subr.bf16.mxu1 %v1045_v17  ;;  %v1083_v47 = vld [vmem:[%s1390_s0 + $0x68] ss:$16 sps:$4 sm:$0xff]   ;;  %v1084_v48 = vld [vmem:[%s1390_s0 + $0x84] ss:$16 sps:$4 sm:$0xff]   ;;  %v1086_v49 = vld [vmem:[%s1390_s0 + $0x8c] ss:$16 sps:$4 sm:$0xff]  }
  0x13   :  { %v1088_v50 = vld [vmem:[%s1390_s0 + $0x80] ss:$16 sps:$4 sm:$0xff]   ;;  %v1089_v51 = vld [vmem:[%s1390_s0 + $0x88] ss:$16 sps:$4 sm:$0xff]   ;;  %v1090_v52 = vld [vmem:[%s1390_s0 + $0xa4] ss:$16 sps:$4 sm:$0xff]  }
  0x14   :  { %909 = vmatpush3.bf16.msra.mxu0 %v1046_v18  ;;  %v1092_v53 = vld [vmem:[%s1390_s0 + $0xac] ss:$16 sps:$4 sm:$0xff]   ;;  %v1094_v54 = vld [vmem:[%s1390_s0 + $0xa0] ss:$16 sps:$4 sm:$0xff]   ;;  %v1095_v55 = vld [vmem:[%s1390_s0 + $0xa8] ss:$16 sps:$4 sm:$0xff]  }
  0x15   :  { %973 = vmatpush3.bf16.msra.mxu1 %v1047_v19  ;;  %910 = vmatprep.subr.bf16.mxu0 %v1048_v20  ;;  %v1096_v56 = vld [vmem:[%s1390_s0 + $0xc4] ss:$16 sps:$4 sm:$0xff]   ;;  %v1098_v57 = vld [vmem:[%s1390_s0 + $0xcc] ss:$16 sps:$4 sm:$0xff]   ;;  %v1100_v58 = vld [vmem:[%s1390_s0 + $0xc0] ss:$16 sps:$4 sm:$0xff]  }
  0x16   :  { %974 = vmatprep.subr.bf16.mxu1 %v1049_v21  ;;  %v1101_v59 = vld [vmem:[%s1390_s0 + $0xc8] ss:$16 sps:$4 sm:$0xff]   ;;  %v1102_v60 = vld [vmem:[%s1390_s0 + $0xe4] ss:$16 sps:$4 sm:$0xff]   ;;  %v1104_v61 = vld [vmem:[%s1390_s0 + $0xec] ss:$16 sps:$4 sm:$0xff]  }
  0x17   :  { %v1106_v62 = vld [vmem:[%s1390_s0 + $0xe0] ss:$16 sps:$4 sm:$0xff]   ;;  %v1107_v63 = vld [vmem:[%s1390_s0 + $0xe8] ss:$16 sps:$4 sm:$0xff]  }
  0x18   :  { %911 = vmatpush3.bf16.msra.mxu0 %v1050_v22  ;;  %v1323_v7 = vld [vmem:[%s1391_s2] ss:$0 sm:$0xff] }
  0x19   :  { %975 = vmatpush3.bf16.msra.mxu1 %v1051_v23  ;;  %912 = vmatprep.subr.bf16.mxu0 %v1052_v24 }
  0x1a   :  { %976 = vmatprep.subr.bf16.mxu1 %v1053_v25 }
  0x1c   :  { %913 = vmatpush3.bf16.msra.mxu0 %v1054_v26 }
  0x1d   :  { %977 = vmatpush3.bf16.msra.mxu1 %v1055_v27  ;;  %914 = vmatprep.subr.bf16.mxu0 %v1056_v28 }
  0x1e   :  { %978 = vmatprep.subr.bf16.mxu1 %v1057_v29 }
  0x20   :  { %915 = vmatpush3.bf16.msra.mxu0 %v1058_v30 }
  0x21   :  { %979 = vmatpush3.bf16.msra.mxu1 %v1059_v31 }
  0x23   :  { %532 = vmatmul.mubr.bf16.vlgmr.msra.gmra.mxu0 %v1060_v32 }
  0x24   :  { %629 = vmatmul.mubr.bf16.vlgmr.msra.gmra.mxu1 %v1063_v34  ;;  %539 = vmatprep.mubr.bf16.mxu0 %v1066_v36 }
  0x25   :  { %636 = vmatprep.mubr.bf16.mxu1 %v1068_v37 }
  0x2b   :  { %540 = vmatmul.mubr.bf16.gmra.mxu0 %v1070_v38 }
  0x2c   :  { %637 = vmatmul.mubr.bf16.gmra.mxu1 %v1071_v39  ;;  %547 = vmatprep.mubr.bf16.mxu0 %v1072_v40 }
  0x2d   :  { %644 = vmatprep.mubr.bf16.mxu1 %v1074_v41 }
  0x33   :  { %548 = vmatmul.mubr.bf16.gmra.mxu0 %v1076_v42 }
  0x34   :  { %645 = vmatmul.mubr.bf16.gmra.mxu1 %v1077_v43  ;;  %555 = vmatprep.mubr.bf16.mxu0 %v1078_v44 }
  0x35   :  { %652 = vmatprep.mubr.bf16.mxu1 %v1080_v45 }
  0x3b   :  { %556 = vmatmul.mubr.bf16.gmra.mxu0 %v1082_v46 }
  0x3c   :  { %653 = vmatmul.mubr.bf16.gmra.mxu1 %v1083_v47  ;;  %563 = vmatprep.mubr.bf16.mxu0 %v1084_v48 }
  0x3d   :  { %660 = vmatprep.mubr.bf16.mxu1 %v1086_v49 }
  0x43   :  { %564 = vmatmul.mubr.bf16.gmra.mxu0 %v1088_v50 }
  0x44   :  { %661 = vmatmul.mubr.bf16.gmra.mxu1 %v1089_v51  ;;  %571 = vmatprep.mubr.bf16.mxu0 %v1090_v52 }
  0x45   :  { %668 = vmatprep.mubr.bf16.mxu1 %v1092_v53 }
  0x4b   :  { %572 = vmatmul.mubr.bf16.gmra.mxu0 %v1094_v54 }
  0x4c   :  { %669 = vmatmul.mubr.bf16.gmra.mxu1 %v1095_v55  ;;  %579 = vmatprep.mubr.bf16.mxu0 %v1096_v56 }
  0x4d   :  { %676 = vmatprep.mubr.bf16.mxu1 %v1098_v57 }
  0x53   :  { %580 = vmatmul.mubr.bf16.gmra.mxu0 %v1100_v58 }
  0x54   :  { %677 = vmatmul.mubr.bf16.gmra.mxu1 %v1101_v59  ;;  %587 = vmatprep.mubr.bf16.mxu0 %v1102_v60 }
  0x55   :  { %684 = vmatprep.mubr.bf16.mxu1 %v1104_v61 }
  0x5b   :  { %588 = vmatmul.mubr.bf16.gmra.mxu0 %v1106_v62 }
  0x5c   :  { %685 = vmatmul.mubr.bf16.gmra.mxu1 %v1107_v63 }
  0xe3   :  { %v916_v0 = vpop.f32.mrf.mxu0 }
  0xe4   :  { %v980_v1 = vpop.f32.mrf.mxu1 }
  0xe5   :  { %v917_v2 = vpop.f32.mrf.mxu0 }
  0xe6   :  { %v918_v3 = vadd.f32 %v917_v2, %v916_v0  ;;  %v981_v4 = vpop.f32.mrf.mxu1 }
  0xe7   :  { %v982_v5 = vadd.f32 %v981_v4, %v980_v1  ;;  %v919_v6 = vpop.f32.mrf.mxu0 }
  0xe8   :  { %v983_v8 = vpop.f32.mrf.mxu1 }
  0xe9   :  { %v631_v9 = vadd.f32 %v982_v5, %v918_v3  ;;  %v920_v10 = vpop.f32.mrf.mxu0 }
  0xea   :  { %v921_v11 = vadd.f32 %v920_v10, %v919_v6  ;;  %v984_v12 = vpop.f32.mrf.mxu1 }
  0xeb   :  { %v751_v13 = vadd.f32 %v1323_v7, %v631_v9  ;;  %v985_v14 = vadd.f32 %v984_v12, %v983_v8  ;;  %v922_v15 = vpop.f32.mrf.mxu0 }
  0xec   :  { %v986_v16 = vpop.f32.mrf.mxu1 }
  0xed   :  { %vm767_vm0 = vcmp.ge.f32.partialorder %v751_v13, 0.0  ;;  %v783_v17 = vmul.f32 0.2, %v751_v13  ;;  %v634_v18 = vadd.f32 %v985_v14, %v921_v11  ;;  %v923_v19 = vpop.f32.mrf.mxu0 }
  0xee   :  { %v924_v20 = vadd.f32 %v923_v19, %v922_v15  ;;  %v987_v21 = vpop.f32.mrf.mxu1 }
  0xef   :  { %v799_v22 = vsel %vm767_vm0, %v751_v13, %v783_v17  ;;  %v752_v23 = vadd.f32 %v1323_v7, %v634_v18  ;;  %v988_v24 = vadd.f32 %v987_v21, %v986_v16  ;;  %v925_v25 = vpop.f32.mrf.mxu0 }
  0xf0   :  { %815 = vst [vmem:[%s1392_s3] sm:$0xff] %v799_v22  ;;  %v989_v26 = vpop.f32.mrf.mxu1 }
  0xf1   :  { %vm768_vm1 = vcmp.ge.f32.partialorder %v752_v23, 0.0  ;;  %v784_v27 = vmul.f32 0.2, %v752_v23  ;;  %v639_v28 = vadd.f32 %v988_v24, %v924_v20  ;;  %v926_v29 = vpop.f32.mrf.mxu0 }
  0xf2   :  { %v927_v30 = vadd.f32 %v926_v29, %v925_v25  ;;  %v990_v31 = vpop.f32.mrf.mxu1 }
  0xf3   :  { %v800_v32 = vsel %vm768_vm1, %v752_v23, %v784_v27  ;;  %v753_v33 = vadd.f32 %v1323_v7, %v639_v28  ;;  %v991_v34 = vadd.f32 %v990_v31, %v989_v26  ;;  %v928_v35 = vpop.f32.mrf.mxu0 }
  0xf4   :  { %816 = vst [vmem:[%s1392_s3 + $0x8] sm:$0xff] %v800_v32  ;;  %v992_v36 = vpop.f32.mrf.mxu1 }
  0xf5   :  { %vm769_vm2 = vcmp.ge.f32.partialorder %v753_v33, 0.0  ;;  %v785_v37 = vmul.f32 0.2, %v753_v33  ;;  %v642_v38 = vadd.f32 %v991_v34, %v927_v30  ;;  %v929_v39 = vpop.f32.mrf.mxu0 }
  0xf6   :  { %v930_v40 = vadd.f32 %v929_v39, %v928_v35  ;;  %v993_v41 = vpop.f32.mrf.mxu1 }
  0xf7   :  { %v801_v42 = vsel %vm769_vm2, %v753_v33, %v785_v37  ;;  %v754_v43 = vadd.f32 %v1323_v7, %v642_v38  ;;  %v994_v44 = vadd.f32 %v993_v41, %v992_v36  ;;  %v931_v45 = vpop.f32.mrf.mxu0 }
  0xf8   :  { %817 = vst [vmem:[%s1392_s3 + $0x10] sm:$0xff] %v801_v42  ;;  %v995_v46 = vpop.f32.mrf.mxu1 }
  0xf9   :  { %vm770_vm3 = vcmp.ge.f32.partialorder %v754_v43, 0.0  ;;  %v786_v47 = vmul.f32 0.2, %v754_v43  ;;  %v647_v48 = vadd.f32 %v994_v44, %v930_v40  ;;  %v932_v49 = vpop.f32.mrf.mxu0 }
  0xfa   :  { %v933_v50 = vadd.f32 %v932_v49, %v931_v45  ;;  %v996_v51 = vpop.f32.mrf.mxu1 }
  0xfb   :  { %v802_v52 = vsel %vm770_vm3, %v754_v43, %v786_v47  ;;  %v755_v53 = vadd.f32 %v1323_v7, %v647_v48  ;;  %v997_v54 = vadd.f32 %v996_v51, %v995_v46  ;;  %v934_v55 = vpop.f32.mrf.mxu0 }
  0xfc   :  { %818 = vst [vmem:[%s1392_s3 + $0x18] sm:$0xff] %v802_v52  ;;  %v998_v56 = vpop.f32.mrf.mxu1 }
  0xfd   :  { %vm771_vm4 = vcmp.ge.f32.partialorder %v755_v53, 0.0  ;;  %v787_v57 = vmul.f32 0.2, %v755_v53  ;;  %v650_v58 = vadd.f32 %v997_v54, %v933_v50  ;;  %v935_v59 = vpop.f32.mrf.mxu0 }
  0xfe   :  { %v936_v60 = vadd.f32 %v935_v59, %v934_v55  ;;  %v999_v61 = vpop.f32.mrf.mxu1 }
  0xff   :  { %v803_v62 = vsel %vm771_vm4, %v755_v53, %v787_v57  ;;  %v756_v63 = vadd.f32 %v1323_v7, %v650_v58  ;;  %v1000_v0 = vadd.f32 %v999_v61, %v998_v56  ;;  %v937_v1 = vpop.f32.mrf.mxu0 }
 0x100   :  { %819 = vst [vmem:[%s1392_s3 + $0x20] sm:$0xff] %v803_v62  ;;  %v1001_v2 = vpop.f32.mrf.mxu1 }
 0x101   :  { %vm772_vm5 = vcmp.ge.f32.partialorder %v756_v63, 0.0  ;;  %v788_v3 = vmul.f32 0.2, %v756_v63  ;;  %v655_v4 = vadd.f32 %v1000_v0, %v936_v60  ;;  %v938_v5 = vpop.f32.mrf.mxu0 }
 0x102   :  { %v939_v6 = vadd.f32 %v938_v5, %v937_v1  ;;  %v1002_v8 = vpop.f32.mrf.mxu1 }
 0x103   :  { %v804_v9 = vsel %vm772_vm5, %v756_v63, %v788_v3  ;;  %v757_v10 = vadd.f32 %v1323_v7, %v655_v4  ;;  %v1003_v11 = vadd.f32 %v1002_v8, %v1001_v2  ;;  %v940_v12 = vpop.f32.mrf.mxu0 }
 0x104   :  { %820 = vst [vmem:[%s1392_s3 + $0x28] sm:$0xff] %v804_v9  ;;  %v1004_v13 = vpop.f32.mrf.mxu1 }
 0x105   :  { %vm773_vm6 = vcmp.ge.f32.partialorder %v757_v10, 0.0  ;;  %v789_v14 = vmul.f32 0.2, %v757_v10  ;;  %v658_v15 = vadd.f32 %v1003_v11, %v939_v6  ;;  %v941_v16 = vpop.f32.mrf.mxu0 }
 0x106   :  { %v942_v17 = vadd.f32 %v941_v16, %v940_v12  ;;  %v1005_v18 = vpop.f32.mrf.mxu1 }
 0x107   :  { %v805_v19 = vsel %vm773_vm6, %v757_v10, %v789_v14  ;;  %v758_v20 = vadd.f32 %v1323_v7, %v658_v15  ;;  %v1006_v21 = vadd.f32 %v1005_v18, %v1004_v13  ;;  %v943_v22 = vpop.f32.mrf.mxu0 }
 0x108   :  { %821 = vst [vmem:[%s1392_s3 + $0x30] sm:$0xff] %v805_v19  ;;  %v1007_v23 = vpop.f32.mrf.mxu1 }
 0x109   :  { %vm774_vm7 = vcmp.ge.f32.partialorder %v758_v20, 0.0  ;;  %v790_v24 = vmul.f32 0.2, %v758_v20  ;;  %v663_v25 = vadd.f32 %v1006_v21, %v942_v17  ;;  %v944_v26 = vpop.f32.mrf.mxu0 }
 0x10a   :  { %v945_v27 = vadd.f32 %v944_v26, %v943_v22  ;;  %v1008_v28 = vpop.f32.mrf.mxu1 }
 0x10b   :  { %v806_v29 = vsel %vm774_vm7, %v758_v20, %v790_v24  ;;  %v759_v30 = vadd.f32 %v1323_v7, %v663_v25  ;;  %v1009_v31 = vadd.f32 %v1008_v28, %v1007_v23  ;;  %v946_v32 = vpop.f32.mrf.mxu0 }
 0x10c   :  { %822 = vst [vmem:[%s1392_s3 + $0x38] sm:$0xff] %v806_v29  ;;  %v1010_v33 = vpop.f32.mrf.mxu1 }
 0x10d   :  { %vm775_vm8 = vcmp.ge.f32.partialorder %v759_v30, 0.0  ;;  %v791_v34 = vmul.f32 0.2, %v759_v30  ;;  %v666_v35 = vadd.f32 %v1009_v31, %v945_v27  ;;  %v947_v36 = vpop.f32.mrf.mxu0 }
 0x10e   :  { %v948_v37 = vadd.f32 %v947_v36, %v946_v32  ;;  %v1011_v38 = vpop.f32.mrf.mxu1 }
 0x10f   :  { %v807_v39 = vsel %vm775_vm8, %v759_v30, %v791_v34  ;;  %v760_v40 = vadd.f32 %v1323_v7, %v666_v35  ;;  %v1012_v41 = vadd.f32 %v1011_v38, %v1010_v33  ;;  %v949_v42 = vpop.f32.mrf.mxu0 }
 0x110   :  { %823 = vst [vmem:[%s1392_s3 + $0x40] sm:$0xff] %v807_v39  ;;  %v1013_v43 = vpop.f32.mrf.mxu1 }
 0x111   :  { %vm776_vm9 = vcmp.ge.f32.partialorder %v760_v40, 0.0  ;;  %v792_v44 = vmul.f32 0.2, %v760_v40  ;;  %v671_v45 = vadd.f32 %v1012_v41, %v948_v37  ;;  %v950_v46 = vpop.f32.mrf.mxu0 }
 0x112   :  { %v951_v47 = vadd.f32 %v950_v46, %v949_v42  ;;  %v1014_v48 = vpop.f32.mrf.mxu1 }
 0x113   :  { %v808_v49 = vsel %vm776_vm9, %v760_v40, %v792_v44  ;;  %v761_v50 = vadd.f32 %v1323_v7, %v671_v45  ;;  %v1015_v51 = vadd.f32 %v1014_v48, %v1013_v43  ;;  %v952_v52 = vpop.f32.mrf.mxu0 }
 0x114   :  { %824 = vst [vmem:[%s1392_s3 + $0x48] sm:$0xff] %v808_v49  ;;  %v1016_v53 = vpop.f32.mrf.mxu1 }
 0x115   :  { %vm777_vm10 = vcmp.ge.f32.partialorder %v761_v50, 0.0  ;;  %v793_v54 = vmul.f32 0.2, %v761_v50  ;;  %v674_v55 = vadd.f32 %v1015_v51, %v951_v47  ;;  %v953_v56 = vpop.f32.mrf.mxu0 }
 0x116   :  { %v954_v57 = vadd.f32 %v953_v56, %v952_v52  ;;  %v1017_v58 = vpop.f32.mrf.mxu1 }
 0x117   :  { %v809_v59 = vsel %vm777_vm10, %v761_v50, %v793_v54  ;;  %v762_v60 = vadd.f32 %v1323_v7, %v674_v55  ;;  %v1018_v61 = vadd.f32 %v1017_v58, %v1016_v53  ;;  %v955_v62 = vpop.f32.mrf.mxu0 }
 0x118   :  { %825 = vst [vmem:[%s1392_s3 + $0x50] sm:$0xff] %v809_v59  ;;  %v1019_v63 = vpop.f32.mrf.mxu1 }
 0x119   :  { %vm778_vm11 = vcmp.ge.f32.partialorder %v762_v60, 0.0  ;;  %v794_v0 = vmul.f32 0.2, %v762_v60  ;;  %v679_v1 = vadd.f32 %v1018_v61, %v954_v57  ;;  %v956_v2 = vpop.f32.mrf.mxu0 }
 0x11a   :  { %v957_v3 = vadd.f32 %v956_v2, %v955_v62  ;;  %v1020_v4 = vpop.f32.mrf.mxu1 }
 0x11b   :  { %v810_v5 = vsel %vm778_vm11, %v762_v60, %v794_v0  ;;  %v763_v6 = vadd.f32 %v1323_v7, %v679_v1  ;;  %v1021_v8 = vadd.f32 %v1020_v4, %v1019_v63  ;;  %v958_v9 = vpop.f32.mrf.mxu0 }
 0x11c   :  { %826 = vst [vmem:[%s1392_s3 + $0x58] sm:$0xff] %v810_v5  ;;  %v1022_v10 = vpop.f32.mrf.mxu1 }
 0x11d   :  { %vm779_vm12 = vcmp.ge.f32.partialorder %v763_v6, 0.0  ;;  %v795_v11 = vmul.f32 0.2, %v763_v6  ;;  %v682_v12 = vadd.f32 %v1021_v8, %v957_v3  ;;  %v959_v13 = vpop.f32.mrf.mxu0 }
 0x11e   :  { %v960_v14 = vadd.f32 %v959_v13, %v958_v9  ;;  %v1023_v15 = vpop.f32.mrf.mxu1 }
 0x11f   :  { %v811_v16 = vsel %vm779_vm12, %v763_v6, %v795_v11  ;;  %v764_v17 = vadd.f32 %v1323_v7, %v682_v12  ;;  %v1024_v18 = vadd.f32 %v1023_v15, %v1022_v10  ;;  %v961_v19 = vpop.f32.mrf.mxu0 }
 0x120   :  { %827 = vst [vmem:[%s1392_s3 + $0x60] sm:$0xff] %v811_v16  ;;  %v1025_v20 = vpop.f32.mrf.mxu1 }
 0x121   :  { %vm780_vm13 = vcmp.ge.f32.partialorder %v764_v17, 0.0  ;;  %v796_v21 = vmul.f32 0.2, %v764_v17  ;;  %v687_v22 = vadd.f32 %v1024_v18, %v960_v14  ;;  %v962_v23 = vpop.f32.mrf.mxu0 }
 0x122   :  { %v963_v24 = vadd.f32 %v962_v23, %v961_v19  ;;  %v1026_v25 = vpop.f32.mrf.mxu1 }
 0x123   :  { %v812_v26 = vsel %vm780_vm13, %v764_v17, %v796_v21  ;;  %v765_v27 = vadd.f32 %v1323_v7, %v687_v22  ;;  %v1027_v28 = vadd.f32 %v1026_v25, %v1025_v20 }
 0x124   :  { %828 = vst [vmem:[%s1392_s3 + $0x68] sm:$0xff] %v812_v26 }
 0x125   :  { %vm781_vm14 = vcmp.ge.f32.partialorder %v765_v27, 0.0  ;;  %v797_v29 = vmul.f32 0.2, %v765_v27  ;;  %v690_v30 = vadd.f32 %v1027_v28, %v963_v24 }
 0x127   :  { %v813_v31 = vsel %vm781_vm14, %v765_v27, %v797_v29  ;;  %v766_v32 = vadd.f32 %v1323_v7, %v690_v30 }
 0x128   :  { %829 = vst [vmem:[%s1392_s3 + $0x70] sm:$0xff] %v813_v31 }
 0x129   :  { %vm782_vm15 = vcmp.ge.f32.partialorder %v766_v32, 0.0  ;;  %v798_v33 = vmul.f32 0.2, %v766_v32 }
 0x12b   :  { %v814_v34 = vsel %vm782_vm15, %v766_v32, %v798_v33 }
 0x12c   :  { %830 = vst [vmem:[%s1392_s3 + $0x78] sm:$0xff] %v814_v34 }

// kernel: _forward_impl.7
= control target key start
LH: loop header
LB: loop body
LE: loop exit
PB: predicated region body
PF: predicated region fallthrough
CT: control target
= control target key end

     0   :  { %s1409_s1 = inlined_call_operand.vmem [shape: bf16[1024,128], index: 1, kind: input, shape index: {}]   ;;  %s1410_s0 = inlined_call_operand.vmem [shape: bf16[32,1024], index: 0, kind: input, shape index: {}]   ;;  %s1411_s2 = inlined_call_operand.vmem [shape: f32[1,128], index: 2, kind: input, shape index: {}]   ;;  %s1412_s3 = inlined_call_operand.vmem [shape: f32[32,128], index: 3, kind: output, shape index: {}]  }
   0x1   :  { %v1070_v0 = vld [vmem:[%s1409_s1 + $0x78] sm:$0xff]   ;;  %v1074_v4 = vld [vmem:[%s1409_s1 + $0x70] sm:$0xff]   ;;  %v1078_v8 = vld [vmem:[%s1409_s1 + $0x68] sm:$0xff]  }
   0x2   :  { %v1071_v1 = vld [vmem:[%s1409_s1 + $0xf8] sm:$0xff]   ;;  %958 = vmatprep.subr.bf16.mxu0 %v1070_v0  ;;  %v1075_v5 = vld [vmem:[%s1409_s1 + $0xf0] sm:$0xff]   ;;  %v1079_v9 = vld [vmem:[%s1409_s1 + $0xe8] sm:$0xff]  }
   0x3   :  { %v1072_v2 = vld [vmem:[%s1409_s1 + $0x38] sm:$0xff]   ;;  %986 = vmatprep.subr.bf16.mxu1 %v1071_v1  ;;  %v1076_v6 = vld [vmem:[%s1409_s1 + $0x30] sm:$0xff]   ;;  %v1080_v10 = vld [vmem:[%s1409_s1 + $0x28] sm:$0xff]  }
   0x4   :  { %v1073_v3 = vld [vmem:[%s1409_s1 + $0xb8] sm:$0xff]   ;;  %959 = vmatpush3.bf16.msra.mxu0 %v1072_v2  ;;  %v1077_v7 = vld [vmem:[%s1409_s1 + $0xb0] sm:$0xff]   ;;  %v1081_v11 = vld [vmem:[%s1409_s1 + $0xa8] sm:$0xff]  }
   0x5   :  { %987 = vmatpush3.bf16.msra.mxu1 %v1073_v3  ;;  %960 = vmatprep.subr.bf16.mxu0 %v1074_v4  ;;  %v1082_v12 = vld [vmem:[%s1409_s1 + $0x60] sm:$0xff]   ;;  %v1086_v16 = vld [vmem:[%s1409_s1 + $0x58] sm:$0xff]   ;;  %v1090_v20 = vld [vmem:[%s1409_s1 + $0x50] sm:$0xff]  }
   0x6   :  { %988 = vmatprep.subr.bf16.mxu1 %v1075_v5  ;;  %v1083_v13 = vld [vmem:[%s1409_s1 + $0xe0] sm:$0xff]   ;;  %v1087_v17 = vld [vmem:[%s1409_s1 + $0xd8] sm:$0xff]   ;;  %v1091_v21 = vld [vmem:[%s1409_s1 + $0xd0] sm:$0xff]  }
   0x7   :  { %v1084_v14 = vld [vmem:[%s1409_s1 + $0x20] sm:$0xff]   ;;  %v1088_v18 = vld [vmem:[%s1409_s1 + $0x18] sm:$0xff]   ;;  %v1092_v22 = vld [vmem:[%s1409_s1 + $0x10] sm:$0xff]  }
   0x8   :  { %961 = vmatpush3.bf16.msra.mxu0 %v1076_v6  ;;  %v1085_v15 = vld [vmem:[%s1409_s1 + $0xa0] sm:$0xff]   ;;  %v1089_v19 = vld [vmem:[%s1409_s1 + $0x98] sm:$0xff]   ;;  %v1093_v23 = vld [vmem:[%s1409_s1 + $0x90] sm:$0xff]  }
   0x9   :  { %989 = vmatpush3.bf16.msra.mxu1 %v1077_v7  ;;  %962 = vmatprep.subr.bf16.mxu0 %v1078_v8  ;;  %v1094_v24 = vld [vmem:[%s1409_s1 + $0x48] sm:$0xff]   ;;  %v1098_v28 = vld [vmem:[%s1409_s1 + $0x40] sm:$0xff]   ;;  %v1102_v40 = vld [vmem:[%s1409_s1 + $0x178] sm:$0xff]  }
   0xa   :  { %990 = vmatprep.subr.bf16.mxu1 %v1079_v9  ;;  %v1095_v25 = vld [vmem:[%s1409_s1 + $0xc8] sm:$0xff]   ;;  %v1099_v29 = vld [vmem:[%s1409_s1 + $0xc0] sm:$0xff]   ;;  %v1103_v41 = vld [vmem:[%s1409_s1 + $0x1f8] sm:$0xff]  }
   0xb   :  { %v1096_v26 = vld [vmem:[%s1409_s1 + $0x8] sm:$0xff]   ;;  %v1100_v30 = vld [vmem:[%s1409_s1] sm:$0xff]   ;;  %v1104_v42 = vld [vmem:[%s1409_s1 + $0x138] sm:$0xff]  }
   0xc   :  { %963 = vmatpush3.bf16.msra.mxu0 %v1080_v10  ;;  %v1097_v27 = vld [vmem:[%s1409_s1 + $0x88] sm:$0xff]   ;;  %v1101_v31 = vld [vmem:[%s1409_s1 + $0x80] sm:$0xff]   ;;  %v1105_v43 = vld [vmem:[%s1409_s1 + $0x1b8] sm:$0xff]  }
   0xd   :  { %991 = vmatpush3.bf16.msra.mxu1 %v1081_v11  ;;  %964 = vmatprep.subr.bf16.mxu0 %v1082_v12  ;;  %v27_v32 = vld [vmem:[%s1410_s0] sm:$0xff]  ;;  %v28_v34 = vld [vmem:[%s1410_s0 + $0x8] sm:$0xff]  ;;  %v1106_v44 = vld [vmem:[%s1409_s1 + $0x170] sm:$0xff]  }
   0xe   :  { %992 = vmatprep.subr.bf16.mxu1 %v1083_v13  ;;  %v31_v33 = vld [vmem:[%s1410_s0 + $0x20] sm:$0xff]  ;;  %v32_v37 = vld [vmem:[%s1410_s0 + $0x28] sm:$0xff]  ;;  %v1107_v45 = vld [vmem:[%s1409_s1 + $0x1f0] sm:$0xff]  }
   0xf   :  { %v877_v35 = vcombine.low %v27_v32, %v31_v33  ;;  %v878_v36 = vcombine.high %v27_v32, %v31_v33  ;;  %v879_v38 = vcombine.low %v28_v34, %v32_v37  ;;  %v880_v39 = vcombine.high %v28_v34, %v32_v37  ;;  %v1108_v46 = vld [vmem:[%s1409_s1 + $0x130] sm:$0xff]   ;;  %v1110_v48 = vld [vmem:[%s1409_s1 + $0x168] sm:$0xff]   ;;  %v1114_v52 = vld [vmem:[%s1409_s1 + $0x160] sm:$0xff]  }
  0x10   :  { %965 = vmatpush3.bf16.msra.mxu0 %v1084_v14  ;;  %v1109_v47 = vld [vmem:[%s1409_s1 + $0x1b0] sm:$0xff]   ;;  %v1111_v49 = vld [vmem:[%s1409_s1 + $0x1e8] sm:$0xff]   ;;  %v1115_v53 = vld [vmem:[%s1409_s1 + $0x1e0] sm:$0xff]  }
  0x11   :  { %993 = vmatpush3.bf16.msra.mxu1 %v1085_v15  ;;  %966 = vmatprep.subr.bf16.mxu0 %v1086_v16  ;;  %v1112_v50 = vld [vmem:[%s1409_s1 + $0x128] sm:$0xff]   ;;  %v1116_v54 = vld [vmem:[%s1409_s1 + $0x120] sm:$0xff]   ;;  %v1118_v56 = vld [vmem:[%s1409_s1 + $0x158] sm:$0xff]  }
  0x12   :  { %994 = vmatprep.subr.bf16.mxu1 %v1087_v17  ;;  %667 = vmatprep.mubr.bf16.mxu0 %v878_v36  ;;  %v1113_v51 = vld [vmem:[%s1409_s1 + $0x1a8] sm:$0xff]   ;;  %v1117_v55 = vld [vmem:[%s1409_s1 + $0x1a0] sm:$0xff]   ;;  %v1119_v57 = vld [vmem:[%s1409_s1 + $0x1d8] sm:$0xff]  }
  0x13   :  { %716 = vmatprep.mubr.bf16.mxu1 %v880_v39  ;;  %v35_v58 = vld [vmem:[%s1410_s0 + $0x40] sm:$0xff]  ;;  %v36_v61 = vld [vmem:[%s1410_s0 + $0x48] sm:$0xff]  ;;  %v1120_v1 = vld [vmem:[%s1409_s1 + $0x118] sm:$0xff]  }
  0x14   :  { %967 = vmatpush3.bf16.msra.mxu0 %v1088_v18  ;;  %v39_v59 = vld [vmem:[%s1410_s0 + $0x60] sm:$0xff]  ;;  %v40_v62 = vld [vmem:[%s1410_s0 + $0x68] sm:$0xff]  ;;  %v1121_v3 = vld [vmem:[%s1409_s1 + $0x198] sm:$0xff]  }
  0x15   :  { %995 = vmatpush3.bf16.msra.mxu1 %v1089_v19  ;;  %968 = vmatprep.subr.bf16.mxu0 %v1090_v20  ;;  %v886_v60 = vcombine.high %v35_v58, %v39_v59  ;;  %v885_v63 = vcombine.low %v35_v58, %v39_v59  ;;  %v888_v0 = vcombine.high %v36_v61, %v40_v62  ;;  %v1122_v4 = vld [vmem:[%s1409_s1 + $0x150] sm:$0xff]   ;;  %v1126_v8 = vld [vmem:[%s1409_s1 + $0x148] sm:$0xff]   ;;  %v1130_v12 = vld [vmem:[%s1409_s1 + $0x140] sm:$0xff]  }
  0x16   :  { %996 = vmatprep.subr.bf16.mxu1 %v1091_v21  ;;  %v887_v2 = vcombine.low %v36_v61, %v40_v62  ;;  %v1123_v5 = vld [vmem:[%s1409_s1 + $0x1d0] sm:$0xff]   ;;  %v1127_v9 = vld [vmem:[%s1409_s1 + $0x1c8] sm:$0xff]   ;;  %v1131_v13 = vld [vmem:[%s1409_s1 + $0x1c0] sm:$0xff]  }
  0x17   :  { %v1124_v6 = vld [vmem:[%s1409_s1 + $0x110] sm:$0xff]   ;;  %v1128_v10 = vld [vmem:[%s1409_s1 + $0x108] sm:$0xff]   ;;  %v1132_v14 = vld [vmem:[%s1409_s1 + $0x100] sm:$0xff]  }
  0x18   :  { %969 = vmatpush3.bf16.msra.mxu0 %v1092_v22  ;;  %v1125_v7 = vld [vmem:[%s1409_s1 + $0x190] sm:$0xff]   ;;  %v1129_v11 = vld [vmem:[%s1409_s1 + $0x188] sm:$0xff]   ;;  %v1133_v15 = vld [vmem:[%s1409_s1 + $0x180] sm:$0xff]  }
  0x19   :  { %997 = vmatpush3.bf16.msra.mxu1 %v1093_v23  ;;  %970 = vmatprep.subr.bf16.mxu0 %v1094_v24  ;;  %v29_v16 = vld [vmem:[%s1410_s0 + $0x10] sm:$0xff]  ;;  %v30_v18 = vld [vmem:[%s1410_s0 + $0x18] sm:$0xff] }
  0x1a   :  { %998 = vmatprep.subr.bf16.mxu1 %v1095_v25  ;;  %v33_v17 = vld [vmem:[%s1410_s0 + $0x30] sm:$0xff]  ;;  %v34_v19 = vld [vmem:[%s1410_s0 + $0x38] sm:$0xff] }
  0x1b   :  { %v881_v20 = vcombine.low %v29_v16, %v33_v17  ;;  %v882_v21 = vcombine.high %v29_v16, %v33_v17  ;;  %v883_v22 = vcombine.low %v30_v18, %v34_v19  ;;  %v884_v23 = vcombine.high %v30_v18, %v34_v19  ;;  %v37_v24 = vld [vmem:[%s1410_s0 + $0x50] sm:$0xff] }
  0x1c   :  { %971 = vmatpush3.bf16.msra.mxu0 %v1096_v26  ;;  %v41_v25 = vld [vmem:[%s1410_s0 + $0x70] sm:$0xff]  ;;  %v38_v26 = vld [vmem:[%s1410_s0 + $0x58] sm:$0xff] }
  0x1d   :  { %999 = vmatpush3.bf16.msra.mxu1 %v1097_v27  ;;  %972 = vmatprep.subr.bf16.mxu0 %v1098_v28  ;;  %v890_v27 = vcombine.high %v37_v24, %v41_v25  ;;  %v42_v28 = vld [vmem:[%s1410_s0 + $0x78] sm:$0xff] }
  0x1e   :  { %1000 = vmatprep.subr.bf16.mxu1 %v1099_v29  ;;  %v892_v29 = vcombine.high %v38_v26, %v42_v28 }
  0x20   :  { %973 = vmatpush3.bf16.msra.mxu0 %v1100_v30  ;;  %v889_v30 = vcombine.low %v37_v24, %v41_v25 }
  0x21   :  { %1001 = vmatpush3.bf16.msra.mxu1 %v1101_v31  ;;  %1014 = vmatprep.subr.bf16.mxu0 %v1102_v40  ;;  %v891_v31 = vcombine.low %v38_v26, %v42_v28 }
  0x22   :  { %1042 = vmatprep.subr.bf16.mxu1 %v1103_v41 }
  0x23   :  { %668 = vmatmul.mubr.bf16.vlgmr.msra.gmra.mxu0 %v877_v35 }
  0x24   :  { %717 = vmatmul.mubr.bf16.vlgmr.msra.gmra.mxu1 %v879_v38  ;;  %1015 = vmatpush3.bf16.msra.mxu0 %v1104_v42 }
  0x25   :  { %1043 = vmatpush3.bf16.msra.mxu1 %v1105_v43  ;;  %1016 = vmatprep.subr.bf16.mxu0 %v1106_v44 }
  0x26   :  { %1044 = vmatprep.subr.bf16.mxu1 %v1107_v45  ;;  %675 = vmatprep.mubr.bf16.mxu0 %v886_v60 }
  0x27   :  { %724 = vmatprep.mubr.bf16.mxu1 %v888_v0  ;;  %v957_v0 = vld [vmem:[%s1411_s2] ss:$0 sm:$0xff] }
  0x28   :  { %1017 = vmatpush3.bf16.msra.mxu0 %v1108_v46 }
  0x29   :  { %1045 = vmatpush3.bf16.msra.mxu1 %v1109_v47  ;;  %1018 = vmatprep.subr.bf16.mxu0 %v1110_v48 }
  0x2a   :  { %1046 = vmatprep.subr.bf16.mxu1 %v1111_v49 }
  0x2b   :  { %676 = vmatmul.mubr.bf16.gmra.mxu0 %v885_v63 }
  0x2c   :  { %1019 = vmatpush3.bf16.msra.mxu0 %v1112_v50  ;;  %725 = vmatmul.mubr.bf16.gmra.mxu1 %v887_v2 }
  0x2d   :  { %1047 = vmatpush3.bf16.msra.mxu1 %v1113_v51  ;;  %1020 = vmatprep.subr.bf16.mxu0 %v1114_v52 }
  0x2e   :  { %1048 = vmatprep.subr.bf16.mxu1 %v1115_v53  ;;  %765 = vmatprep.mubr.bf16.mxu0 %v882_v21 }
  0x2f   :  { %814 = vmatprep.mubr.bf16.mxu1 %v884_v23 }
  0x30   :  { %1021 = vmatpush3.bf16.msra.mxu0 %v1116_v54 }
  0x31   :  { %1049 = vmatpush3.bf16.msra.mxu1 %v1117_v55  ;;  %1022 = vmatprep.subr.bf16.mxu0 %v1118_v56 }
  0x32   :  { %1050 = vmatprep.subr.bf16.mxu1 %v1119_v57 }
  0x34   :  { %1023 = vmatpush3.bf16.msra.mxu0 %v1120_v1 }
  0x35   :  { %1051 = vmatpush3.bf16.msra.mxu1 %v1121_v3  ;;  %1024 = vmatprep.subr.bf16.mxu0 %v1122_v4 }
  0x36   :  { %1052 = vmatprep.subr.bf16.mxu1 %v1123_v5 }
  0x38   :  { %1025 = vmatpush3.bf16.msra.mxu0 %v1124_v6 }
  0x39   :  { %1053 = vmatpush3.bf16.msra.mxu1 %v1125_v7  ;;  %1026 = vmatprep.subr.bf16.mxu0 %v1126_v8 }
  0x3a   :  { %1054 = vmatprep.subr.bf16.mxu1 %v1127_v9 }
  0x3c   :  { %1027 = vmatpush3.bf16.msra.mxu0 %v1128_v10 }
  0x3d   :  { %1055 = vmatpush3.bf16.msra.mxu1 %v1129_v11  ;;  %1028 = vmatprep.subr.bf16.mxu0 %v1130_v12 }
  0x3e   :  { %1056 = vmatprep.subr.bf16.mxu1 %v1131_v13 }
  0x40   :  { %1029 = vmatpush3.bf16.msra.mxu0 %v1132_v14 }
  0x41   :  { %1057 = vmatpush3.bf16.msra.mxu1 %v1133_v15 }
  0x43   :  { %766 = vmatmul.mubr.bf16.vlgmr.msra.gmra.mxu0 %v881_v20 }
  0x44   :  { %815 = vmatmul.mubr.bf16.vlgmr.msra.gmra.mxu1 %v883_v22  ;;  %773 = vmatprep.mubr.bf16.mxu0 %v890_v27 }
  0x45   :  { %822 = vmatprep.mubr.bf16.mxu1 %v892_v29 }
  0x4b   :  { %774 = vmatmul.mubr.bf16.gmra.mxu0 %v889_v30 }
  0x4c   :  { %823 = vmatmul.mubr.bf16.gmra.mxu1 %v891_v31 }
  0xe3   :  { %v974_v32 = vpop.f32.mrf.mxu0 }
  0xe4   :  { %v1002_v33 = vpop.f32.mrf.mxu1 }
  0xe5   :  { %v975_v34 = vpop.f32.mrf.mxu0 }
  0xe6   :  { %v1003_v35 = vpop.f32.mrf.mxu1  ;;  %v976_v48 = vadd.f32 %v975_v34, %v974_v32 }
  0xe7   :  { %v977_v36 = vpop.f32.mrf.mxu0  ;;  %v1004_v49 = vadd.f32 %v1003_v35, %v1002_v33 }
  0xe8   :  { %v1005_v37 = vpop.f32.mrf.mxu1 }
  0xe9   :  { %v978_v38 = vpop.f32.mrf.mxu0  ;;  %v719_v54 = vadd.f32 %v1004_v49, %v976_v48 }
  0xea   :  { %v1006_v39 = vpop.f32.mrf.mxu1  ;;  %v979_v55 = vadd.f32 %v978_v38, %v977_v36 }
  0xeb   :  { %v980_v40 = vpop.f32.mrf.mxu0  ;;  %v1007_v56 = vadd.f32 %v1006_v39, %v1005_v37 }
  0xec   :  { %v1008_v41 = vpop.f32.mrf.mxu1 }
  0xed   :  { %v981_v42 = vpop.f32.mrf.mxu0  ;;  %v722_v3 = vadd.f32 %v1007_v56, %v979_v55 }
  0xee   :  { %v1009_v43 = vpop.f32.mrf.mxu1  ;;  %v982_v62 = vadd.f32 %v981_v42, %v980_v40 }
  0xef   :  { %v983_v44 = vpop.f32.mrf.mxu0  ;;  %v1010_v63 = vadd.f32 %v1009_v43, %v1008_v41 }
  0xf0   :  { %v1011_v45 = vpop.f32.mrf.mxu1 }
  0xf1   :  { %v984_v46 = vpop.f32.mrf.mxu0  ;;  %v727_v11 = vadd.f32 %v1010_v63, %v982_v62 }
  0xf2   :  { %v1012_v47 = vpop.f32.mrf.mxu1  ;;  %v985_v12 = vadd.f32 %v984_v46, %v983_v44 }
  0xf3   :  { %v1013_v13 = vadd.f32 %v1012_v47, %v1011_v45 }
  0xf5   :  { %v730_v25 = vadd.f32 %v1013_v13, %v985_v12 }
 0x103   :  { %v1030_v50 = vpop.f32.mrf.mxu0 }
 0x104   :  { %v1058_v51 = vpop.f32.mrf.mxu1 }
 0x105   :  { %v1031_v52 = vpop.f32.mrf.mxu0 }
 0x106   :  { %v1059_v53 = vpop.f32.mrf.mxu1  ;;  %v1032_v57 = vadd.f32 %v1031_v52, %v1030_v50 }
 0x107   :  { %v1033_v58 = vpop.f32.mrf.mxu0  ;;  %v1060_v61 = vadd.f32 %v1059_v53, %v1058_v51 }
 0x108   :  { %v1061_v59 = vpop.f32.mrf.mxu1  ;;  %v768_v60 = vadd.f32 %v1032_v57, %v719_v54 }
 0x109   :  { %v1034_v1 = vpop.f32.mrf.mxu0 }
 0x10a   :  { %v1062_v2 = vpop.f32.mrf.mxu1  ;;  %v817_v4 = vadd.f32 %v1060_v61, %v768_v60  ;;  %v1035_v5 = vadd.f32 %v1034_v1, %v1033_v58 }
 0x10b   :  { %v1036_v6 = vpop.f32.mrf.mxu0  ;;  %v1063_v10 = vadd.f32 %v1062_v2, %v1061_v59 }
 0x10c   :  { %v1064_v7 = vpop.f32.mrf.mxu1  ;;  %v853_v8 = vadd.f32 %v957_v0, %v817_v4  ;;  %v771_v9 = vadd.f32 %v1035_v5, %v722_v3 }
 0x10d   :  { %v1037_v14 = vpop.f32.mrf.mxu0 }
 0x10e   :  { %v1065_v15 = vpop.f32.mrf.mxu1  ;;  %vm857_vm0 = vcmp.ge.f32.partialorder %v853_v8, 0.0  ;;  %v861_v16 = vmul.f32 0.2, %v853_v8  ;;  %v820_v17 = vadd.f32 %v1063_v10, %v771_v9  ;;  %v1038_v18 = vadd.f32 %v1037_v14, %v1036_v6 }
 0x10f   :  { %v1039_v19 = vpop.f32.mrf.mxu0  ;;  %v1066_v24 = vadd.f32 %v1065_v15, %v1064_v7 }
 0x110   :  { %v1067_v20 = vpop.f32.mrf.mxu1  ;;  %v865_v21 = vsel %vm857_vm0, %v853_v8, %v861_v16  ;;  %v854_v22 = vadd.f32 %v957_v0, %v820_v17  ;;  %v776_v23 = vadd.f32 %v1038_v18, %v727_v11 }
 0x111   :  { %869 = vst [vmem:[%s1412_s3] sm:$0xff] %v865_v21  ;;  %v1040_v26 = vpop.f32.mrf.mxu0 }
 0x112   :  { %v1068_v27 = vpop.f32.mrf.mxu1  ;;  %vm858_vm1 = vcmp.ge.f32.partialorder %v854_v22, 0.0  ;;  %v862_v28 = vmul.f32 0.2, %v854_v22  ;;  %v825_v29 = vadd.f32 %v1066_v24, %v776_v23  ;;  %v1041_v30 = vadd.f32 %v1040_v26, %v1039_v19 }
 0x113   :  { %v1069_v34 = vadd.f32 %v1068_v27, %v1067_v20 }
 0x114   :  { %v866_v31 = vsel %vm858_vm1, %v854_v22, %v862_v28  ;;  %v855_v32 = vadd.f32 %v957_v0, %v825_v29  ;;  %v779_v33 = vadd.f32 %v1041_v30, %v730_v25 }
 0x115   :  { %870 = vst [vmem:[%s1412_s3 + $0x8] sm:$0xff] %v866_v31 }
 0x116   :  { %vm859_vm2 = vcmp.ge.f32.partialorder %v855_v32, 0.0  ;;  %v863_v35 = vmul.f32 0.2, %v855_v32  ;;  %v828_v36 = vadd.f32 %v1069_v34, %v779_v33 }
 0x118   :  { %v867_v37 = vsel %vm859_vm2, %v855_v32, %v863_v35  ;;  %v856_v38 = vadd.f32 %v957_v0, %v828_v36 }
 0x119   :  { %871 = vst [vmem:[%s1412_s3 + $0x10] sm:$0xff] %v867_v37 }
 0x11a   :  { %vm860_vm3 = vcmp.ge.f32.partialorder %v856_v38, 0.0  ;;  %v864_v39 = vmul.f32 0.2, %v856_v38 }
 0x11c   :  { %v868_v40 = vsel %vm860_vm3, %v856_v38, %v864_v39 }
 0x11d   :  { %872 = vst [vmem:[%s1412_s3 + $0x18] sm:$0xff] %v868_v40 }

// kernel: _forward_impl.8
= control target key start
LH: loop header
LB: loop body
LE: loop exit
PB: predicated region body
PF: predicated region fallthrough
CT: control target
= control target key end

     0   :  { %s1834_s12 = smov 0   ;;  %s1836_s13 = smov 0   ;;  %s2072_s0 = inlined_call_operand.vmem [shape: bf16[16,2048], index: 0, kind: input, shape index: {}]   ;;  %s2073_s1 = inlined_call_operand.vmem [shape: bf16[2048,256], index: 1, kind: input, shape index: {}]   ;;  %s2074_s2 = inlined_call_operand.vmem [shape: f32[1,256], index: 2, kind: input, shape index: {}]   ;;  %s2075_s3 = inlined_call_operand.vmem [shape: f32[16,256], index: 3, kind: output, shape index: {}]  }
   0x1   :  { %s1838_s14 = smov 0   ;;  %s1840_s15 = smov 0  }
   0x2   :  { %s1842_s16 = smov 0  }
   0x3 LB: > { %s22_s17 = sadd.s32 1, %s1807_s15  ;;  %p41_p1 = scmp.ne.s32.totalorder %s1799_s13, %s1795_s12  ;;  %s1811_s16 = sphi %s1842_s16, %s13_s16   ;;  %s1807_s15 = sphi %s1840_s15, %s2079_s15   ;;  %s1803_s14 = sphi %s1838_s14, %s2078_s14   ;;  %s1799_s13 = sphi %s1836_s13, %s2077_s13   ;;  %s1795_s12 = sphi %s1834_s12, %s2076_s12  }
   0x4   : > { %p23_p0 = scmp.ge.s32.totalorder %s22_s17, 2  ;;  %p42_p2 = scmp.eq.s32.totalorder %s1811_s16, 0 }
   0x5   : > { %s34_s19 = sadd.s32 1, %s1799_s13  ;;  %p1387_p5 = scmp.ge.s32.totalorder %s1811_s16, 2 }
   0x6   : > { %s2081_s17 = smov (%p23_p0, %s22_s17), 0  ;;  %p43_p3 = por %p42_p2, %p41_p1 }
   0x7   : > { %s30_s18 = ssub.s32 %s1807_s15, %s2081_s17  ;;  %143 = sbr.rel (%p1387_p5) target bundleno = 20 (0x14), region = 20 }
   0x8   : > { %p32_p4 = scmp.eq.s32.totalorder %s30_s18, 0 }
   0xa   : > { %s1869_s20 = scalar_select %p32_p4, %s1799_s13, %s34_s19  }
   0xc   : > { %146 = sbr.rel (!%p43_p3) target bundleno = 20 (0x14), region = 24  ;;  %s148_s21 = sand.u32 (%p43_p3), 1, %s1799_s13  }
   0xd   : > { %s1538_s22 = sshll.u32 (%p43_p3), %s1807_s15, 5  ;;  %s1388_s23 = sshll.u32 (%p43_p3), %s148_s21, 6 }
   0xe   : > { %s156_s26 = scalar_lea.vmem (%p43_p3), %s2072_s0, %s1538_s22  ;;  %s150_s27 = scalar_lea.vmem (%p43_p3), [#allocation3], %s1388_s23 }
   0xf   : > { %v169_v0 = vld [vmem:[%s156_s26] sm:$0xff] (%p43_p3)  ;;  %v171_v1 = vld [vmem:[%s156_s26 + $0x8] sm:$0xff] (%p43_p3)  ;;  %v173_v2 = vld [vmem:[%s156_s26 + $0x10] sm:$0xff] (%p43_p3) }
  0x10   : > { %170 = vst [vmem:[%s150_s27] sm:$0xff] (%p43_p3), %v169_v0  ;;  %172 = vst [vmem:[%s150_s27 + $0x8] sm:$0xff] (%p43_p3), %v171_v1  ;;  %v175_v3 = vld [vmem:[%s156_s26 + $0x18] sm:$0xff] (%p43_p3)  ;;  %v177_v4 = vld [vmem:[%s156_s26 + $0x40] sm:$0xff] (%p43_p3) }
  0x11   : > { %174 = vst [vmem:[%s150_s27 + $0x10] sm:$0xff] %v173_v2  ;;  %v179_v5 = vld [vmem:[%s156_s26 + $0x48] sm:$0xff]  ;;  %176 = vst [vmem:[%s150_s27 + $0x18] sm:$0xff] %v175_v3  ;;  %v181_v6 = vld [vmem:[%s156_s26 + $0x50] sm:$0xff] }
  0x12   : > { %178 = vst [vmem:[%s150_s27 + $0x20] sm:$0xff] %v177_v4  ;;  %180 = vst [vmem:[%s150_s27 + $0x28] sm:$0xff] %v179_v5  ;;  %v183_v7 = vld [vmem:[%s156_s26 + $0x58] sm:$0xff] }
  0x13   : > { %182 = vst [vmem:[%s150_s27 + $0x30] sm:$0xff] %v181_v6  ;;  %184 = vst [vmem:[%s150_s27 + $0x38] sm:$0xff] %v183_v7 }
  0x14 PF: > { %p1391_p6 = scmp.ge.s32.totalorder %s1811_s16, 1  ;;  %p199_p7 = scmp.lt.s32.totalorder %s1811_s16, 3 }
  0x16   : > { %p200_p8 = pnand %p1391_p6, %p199_p7 }
  0x17   : > { %s206_s28 = sand.u32 (!%p200_p8), 1, %s1795_s12   ;;  %s1393_s29 = sshll.u32 (!%p200_p8), %s1803_s14, 7 }
  0x18   : > { %203 = sbr.rel (%p200_p8) target bundleno = 387 (0x183), region = 51  ;;  %s1392_s30 = sshll.u32 (!%p200_p8), %s206_s28, 6 }
  0x19   : > { %p239_p9 = scmp.lt.s32.totalorder (!%p200_p8), %s1393_s29, 255  ;;  %s1886_s8 = scalar_lea.vmem (!%p200_p8), [#allocation3], %s1392_s30 }
  0x1a   : > { %p1396_p10 = scmp.ne.s32.totalorder (!%p200_p8), %s1803_s14, 0 }
  0x1d   : > { %s2083_s29 = smov (!%p239_p9, %s1393_s29), 255  ;;  %255 = sbr.rel (%p1396_p10) target bundleno = 37 (0x25), region = 59 }
  0x1e   : > { %s1539_s4 = sshll.u32 %s2083_s29, 3 }
  0x1f   : > { %s1884_s7 = scalar_lea.vmem %s2073_s1, %s1539_s4 }
  0x22   : > { %v1813_v8 = vmov 0.0  }
  0x23   : > { %256 = vst [vmem:[#allocation2 + $0x10] sm:$0xff] %v1813_v8  ;;  %257 = vst [vmem:[#allocation2] sm:$0xff] %v1813_v8 }
  0x24   : > { %258 = vst [vmem:[#allocation2 + $0x18] sm:$0xff] %v1813_v8  ;;  %259 = vst [vmem:[#allocation2 + $0x8] sm:$0xff] %v1813_v8 }
  0x25 PF: > { %v1581_v9 = vld [vmem:[%s1884_s7 + $0x74] ss:$8 sps:$4 sm:$0xff]   ;;  %v1585_v11 = vld [vmem:[%s1884_s7 + $0x70] ss:$8 sps:$4 sm:$0xff]   ;;  %v1587_v13 = vld [vmem:[%s1884_s7 + $0x64] ss:$8 sps:$4 sm:$0xff]  }
  0x26   : > { %v1583_v10 = vld [vmem:[%s1884_s7 + $0x174] ss:$8 sps:$4 sm:$0xff]   ;;  %1080 = vmatprep.subr.bf16.mxu0 %v1581_v9  ;;  %v1586_v12 = vld [vmem:[%s1884_s7 + $0x170] ss:$8 sps:$4 sm:$0xff]   ;;  %v1589_v14 = vld [vmem:[%s1884_s7 + $0x164] ss:$8 sps:$4 sm:$0xff]  }
  0x27   : > { %1123 = vmatprep.subr.bf16.mxu1 %v1583_v10  ;;  %1081 = vmatpush1.bf16.msra.mxu0 %v1585_v11  ;;  %v1591_v15 = vld [vmem:[%s1884_s7 + $0x60] ss:$8 sps:$4 sm:$0xff]   ;;  %v1593_v17 = vld [vmem:[%s1884_s7 + $0x54] ss:$8 sps:$4 sm:$0xff]   ;;  %v1597_v19 = vld [vmem:[%s1884_s7 + $0x50] ss:$8 sps:$4 sm:$0xff]  }
  0x28   : > { %1124 = vmatpush1.bf16.msra.mxu1 %v1586_v12  ;;  %1082 = vmatprep.subr.bf16.mxu0 %v1587_v13  ;;  %v1592_v16 = vld [vmem:[%s1884_s7 + $0x160] ss:$8 sps:$4 sm:$0xff]   ;;  %v1595_v18 = vld [vmem:[%s1884_s7 + $0x154] ss:$8 sps:$4 sm:$0xff]   ;;  %v1598_v20 = vld [vmem:[%s1884_s7 + $0x150] ss:$8 sps:$4 sm:$0xff]  }
  0x29   : > { %1125 = vmatprep.subr.bf16.mxu1 %v1589_v14  ;;  %v1599_v21 = vld [vmem:[%s1884_s7 + $0x44] ss:$8 sps:$4 sm:$0xff]   ;;  %v1603_v23 = vld [vmem:[%s1884_s7 + $0x40] ss:$8 sps:$4 sm:$0xff]   ;;  %v1605_v25 = vld [vmem:[%s1884_s7 + $0x34] ss:$8 sps:$4 sm:$0xff]  }
  0x2a   : > { %v1601_v22 = vld [vmem:[%s1884_s7 + $0x144] ss:$8 sps:$4 sm:$0xff]   ;;  %v1604_v24 = vld [vmem:[%s1884_s7 + $0x140] ss:$8 sps:$4 sm:$0xff]   ;;  %v1607_v26 = vld [vmem:[%s1884_s7 + $0x134] ss:$8 sps:$4 sm:$0xff]  }
  0x2b   : > { %1083 = vmatpush1.bf16.msra.mxu0 %v1591_v15  ;;  %v1609_v27 = vld [vmem:[%s1884_s7 + $0x30] ss:$8 sps:$4 sm:$0xff]   ;;  %v1611_v29 = vld [vmem:[%s1884_s7 + $0x24] ss:$8 sps:$4 sm:$0xff]   ;;  %v1615_v31 = vld [vmem:[%s1884_s7 + $0x20] ss:$8 sps:$4 sm:$0xff]  }
  0x2c   : > { %1126 = vmatpush1.bf16.msra.mxu1 %v1592_v16  ;;  %1084 = vmatprep.subr.bf16.mxu0 %v1593_v17  ;;  %v1610_v28 = vld [vmem:[%s1884_s7 + $0x130] ss:$8 sps:$4 sm:$0xff]   ;;  %v1613_v30 = vld [vmem:[%s1884_s7 + $0x124] ss:$8 sps:$4 sm:$0xff]   ;;  %v1616_v32 = vld [vmem:[%s1884_s7 + $0x120] ss:$8 sps:$4 sm:$0xff]  }
  0x2d   : > { %1127 = vmatprep.subr.bf16.mxu1 %v1595_v18  ;;  %v1617_v33 = vld [vmem:[%s1884_s7 + $0x14] ss:$8 sps:$4 sm:$0xff]   ;;  %v1621_v35 = vld [vmem:[%s1884_s7 + $0x10] ss:$8 sps:$4 sm:$0xff]   ;;  %v1623_v37 = vld [vmem:[%s1884_s7 + $0x4] ss:$8 sps:$4 sm:$0xff]  }
  0x2e   : > { %v1619_v34 = vld [vmem:[%s1884_s7 + $0x114] ss:$8 sps:$4 sm:$0xff]   ;;  %v1622_v36 = vld [vmem:[%s1884_s7 + $0x110] ss:$8 sps:$4 sm:$0xff]   ;;  %v1625_v38 = vld [vmem:[%s1884_s7 + $0x104] ss:$8 sps:$4 sm:$0xff]  }
  0x2f   : > { %1085 = vmatpush1.bf16.msra.mxu0 %v1597_v19  ;;  %v1627_v39 = vld [vmem:[%s1884_s7] ss:$8 sps:$4 sm:$0xff]   ;;  %v1629_v41 = vld [vmem:[%s1884_s7 + $0xf4] ss:$8 sps:$4 sm:$0xff]   ;;  %v1633_v43 = vld [vmem:[%s1884_s7 + $0xf0] ss:$8 sps:$4 sm:$0xff]  }
  0x30   : > { %1128 = vmatpush1.bf16.msra.mxu1 %v1598_v20  ;;  %1086 = vmatprep.subr.bf16.mxu0 %v1599_v21  ;;  %v1628_v40 = vld [vmem:[%s1884_s7 + $0x100] ss:$8 sps:$4 sm:$0xff]   ;;  %v1631_v42 = vld [vmem:[%s1884_s7 + $0x1f4] ss:$8 sps:$4 sm:$0xff]   ;;  %v1634_v44 = vld [vmem:[%s1884_s7 + $0x1f0] ss:$8 sps:$4 sm:$0xff]  }
  0x31   : > { %1129 = vmatprep.subr.bf16.mxu1 %v1601_v22  ;;  %v1635_v45 = vld [vmem:[%s1884_s7 + $0xe4] ss:$8 sps:$4 sm:$0xff]   ;;  %v1639_v47 = vld [vmem:[%s1884_s7 + $0xe0] ss:$8 sps:$4 sm:$0xff]   ;;  %v1641_v49 = vld [vmem:[%s1884_s7 + $0xd4] ss:$8 sps:$4 sm:$0xff]  }
  0x32   : > { %v1637_v46 = vld [vmem:[%s1884_s7 + $0x1e4] ss:$8 sps:$4 sm:$0xff]   ;;  %v1640_v48 = vld [vmem:[%s1884_s7 + $0x1e0] ss:$8 sps:$4 sm:$0xff]   ;;  %v1643_v50 = vld [vmem:[%s1884_s7 + $0x1d4] ss:$8 sps:$4 sm:$0xff]  }
  0x33   : > { %1087 = vmatpush1.bf16.msra.mxu0 %v1603_v23  ;;  %v1645_v51 = vld [vmem:[%s1884_s7 + $0xd0] ss:$8 sps:$4 sm:$0xff]   ;;  %v1647_v53 = vld [vmem:[%s1884_s7 + $0xc4] ss:$8 sps:$4 sm:$0xff]   ;;  %v1651_v55 = vld [vmem:[%s1884_s7 + $0xc0] ss:$8 sps:$4 sm:$0xff]  }
  0x34   : > { %1130 = vmatpush1.bf16.msra.mxu1 %v1604_v24  ;;  %1088 = vmatprep.subr.bf16.mxu0 %v1605_v25  ;;  %v1646_v52 = vld [vmem:[%s1884_s7 + $0x1d0] ss:$8 sps:$4 sm:$0xff]   ;;  %v1649_v54 = vld [vmem:[%s1884_s7 + $0x1c4] ss:$8 sps:$4 sm:$0xff]   ;;  %v1652_v56 = vld [vmem:[%s1884_s7 + $0x1c0] ss:$8 sps:$4 sm:$0xff]  }
  0x35   : > { %1131 = vmatprep.subr.bf16.mxu1 %v1607_v26  ;;  %v264_v57 = vld [vmem:[%s1886_s8] sm:$0xff]  ;;  %v265_v59 = vld [vmem:[%s1886_s8 + $0x8] sm:$0xff]  ;;  %v1653_v61 = vld [vmem:[%s1884_s7 + $0xb4] ss:$8 sps:$4 sm:$0xff]   ;;  %p1533_p11 = scmp.ne.s32.totalorder %s1803_s14, 1 }
  0x36   : > { %v268_v58 = vld [vmem:[%s1886_s8 + $0x20] sm:$0xff]  ;;  %v269_v60 = vld [vmem:[%s1886_s8 + $0x28] sm:$0xff]  ;;  %v1655_v63 = vld [vmem:[%s1884_s7 + $0x1b4] ss:$8 sps:$4 sm:$0xff]  }
  0x37   : > { %1089 = vmatpush1.bf16.msra.mxu0 %v1609_v27  ;;  %v1398_v62 = vcombine.high %v264_v57, %v268_v58  ;;  %v1400_v0 = vcombine.high %v265_v59, %v269_v60  ;;  %v1657_v1 = vld [vmem:[%s1884_s7 + $0xb0] ss:$8 sps:$4 sm:$0xff]   ;;  %v1659_v3 = vld [vmem:[%s1884_s7 + $0xa4] ss:$8 sps:$4 sm:$0xff]   ;;  %v1663_v5 = vld [vmem:[%s1884_s7 + $0xa0] ss:$8 sps:$4 sm:$0xff]   ;;  %v1397_v17 = vcombine.low %v264_v57, %v268_v58  ;;  %v1399_v18 = vcombine.low %v265_v59, %v269_v60 }
  0x38   : > { %1132 = vmatpush1.bf16.msra.mxu1 %v1610_v28  ;;  %1090 = vmatprep.subr.bf16.mxu0 %v1611_v29  ;;  %v1658_v2 = vld [vmem:[%s1884_s7 + $0x1b0] ss:$8 sps:$4 sm:$0xff]   ;;  %v1661_v4 = vld [vmem:[%s1884_s7 + $0x1a4] ss:$8 sps:$4 sm:$0xff]   ;;  %v1664_v6 = vld [vmem:[%s1884_s7 + $0x1a0] ss:$8 sps:$4 sm:$0xff]  }
  0x39   : > { %1133 = vmatprep.subr.bf16.mxu1 %v1613_v30  ;;  %1112 = vmatprep.mubr.bf16.mxu0 %v1398_v62  ;;  %v1665_v7 = vld [vmem:[%s1884_s7 + $0x94] ss:$8 sps:$4 sm:$0xff]   ;;  %v1669_v9 = vld [vmem:[%s1884_s7 + $0x90] ss:$8 sps:$4 sm:$0xff]   ;;  %v1671_v11 = vld [vmem:[%s1884_s7 + $0x84] ss:$8 sps:$4 sm:$0xff]  }
  0x3a   : > { %1155 = vmatprep.mubr.bf16.mxu1 %v1400_v0  ;;  %v1667_v8 = vld [vmem:[%s1884_s7 + $0x194] ss:$8 sps:$4 sm:$0xff]   ;;  %v1670_v10 = vld [vmem:[%s1884_s7 + $0x190] ss:$8 sps:$4 sm:$0xff]   ;;  %v1673_v12 = vld [vmem:[%s1884_s7 + $0x184] ss:$8 sps:$4 sm:$0xff]  }
  0x3b   : > { %1091 = vmatpush1.bf16.msra.mxu0 %v1615_v31  ;;  %v1675_v13 = vld [vmem:[%s1884_s7 + $0x80] ss:$8 sps:$4 sm:$0xff]   ;;  %v1679_v15 = vld [vmem:[%s1884_s7 + $0x274] ss:$8 sps:$4 sm:$0xff]   ;;  %v1677_v19 = vld [vmem:[%s1884_s7 + $0x270] ss:$8 sps:$4 sm:$0xff]  }
  0x3c   : > { %1134 = vmatpush1.bf16.msra.mxu1 %v1616_v32  ;;  %1092 = vmatprep.subr.bf16.mxu0 %v1617_v33  ;;  %v1676_v14 = vld [vmem:[%s1884_s7 + $0x180] ss:$8 sps:$4 sm:$0xff]   ;;  %v1682_v16 = vld [vmem:[%s1884_s7 + $0x374] ss:$8 sps:$4 sm:$0xff]   ;;  %v1680_v20 = vld [vmem:[%s1884_s7 + $0x370] ss:$8 sps:$4 sm:$0xff]  }
  0x3d   : > { %1135 = vmatprep.subr.bf16.mxu1 %v1619_v34  ;;  %v1685_v21 = vld [vmem:[%s1884_s7 + $0x264] ss:$8 sps:$4 sm:$0xff]   ;;  %v1683_v23 = vld [vmem:[%s1884_s7 + $0x260] ss:$8 sps:$4 sm:$0xff]   ;;  %v1691_v25 = vld [vmem:[%s1884_s7 + $0x254] ss:$8 sps:$4 sm:$0xff]  }
  0x3e   : > { %v1688_v22 = vld [vmem:[%s1884_s7 + $0x364] ss:$8 sps:$4 sm:$0xff]   ;;  %v1686_v24 = vld [vmem:[%s1884_s7 + $0x360] ss:$8 sps:$4 sm:$0xff]   ;;  %v1694_v26 = vld [vmem:[%s1884_s7 + $0x354] ss:$8 sps:$4 sm:$0xff]  }
  0x3f   : > { %1093 = vmatpush1.bf16.msra.mxu0 %v1621_v35  ;;  %v1689_v27 = vld [vmem:[%s1884_s7 + $0x250] ss:$8 sps:$4 sm:$0xff]   ;;  %v1697_v29 = vld [vmem:[%s1884_s7 + $0x244] ss:$8 sps:$4 sm:$0xff]   ;;  %v1695_v31 = vld [vmem:[%s1884_s7 + $0x240] ss:$8 sps:$4 sm:$0xff]  }
  0x40   : > { %1136 = vmatpush1.bf16.msra.mxu1 %v1622_v36  ;;  %1094 = vmatprep.subr.bf16.mxu0 %v1623_v37  ;;  %v1692_v28 = vld [vmem:[%s1884_s7 + $0x350] ss:$8 sps:$4 sm:$0xff]   ;;  %v1700_v30 = vld [vmem:[%s1884_s7 + $0x344] ss:$8 sps:$4 sm:$0xff]   ;;  %v1698_v32 = vld [vmem:[%s1884_s7 + $0x340] ss:$8 sps:$4 sm:$0xff]  }
  0x41   : > { %1137 = vmatprep.subr.bf16.mxu1 %v1625_v38  ;;  %v1703_v33 = vld [vmem:[%s1884_s7 + $0x234] ss:$8 sps:$4 sm:$0xff]   ;;  %v1701_v35 = vld [vmem:[%s1884_s7 + $0x230] ss:$8 sps:$4 sm:$0xff]   ;;  %v1709_v37 = vld [vmem:[%s1884_s7 + $0x224] ss:$8 sps:$4 sm:$0xff]  }
  0x42   : > { %v1706_v34 = vld [vmem:[%s1884_s7 + $0x334] ss:$8 sps:$4 sm:$0xff]   ;;  %v1704_v36 = vld [vmem:[%s1884_s7 + $0x330] ss:$8 sps:$4 sm:$0xff]   ;;  %v1712_v38 = vld [vmem:[%s1884_s7 + $0x324] ss:$8 sps:$4 sm:$0xff]  }
  0x43   : > { %1095 = vmatpush1.bf16.msra.mxu0 %v1627_v39  ;;  %v1707_v39 = vld [vmem:[%s1884_s7 + $0x220] ss:$8 sps:$4 sm:$0xff]   ;;  %v1725_v57 = vld [vmem:[%s1884_s7 + $0x2f0] ss:$8 sps:$4 sm:$0xff]   ;;  %v1733_v59 = vld [vmem:[%s1884_s7 + $0x2e4] ss:$8 sps:$4 sm:$0xff]  }
  0x44   : > { %1138 = vmatpush1.bf16.msra.mxu1 %v1628_v40  ;;  %1096 = vmatprep.subr.bf16.mxu0 %v1629_v41  ;;  %v1710_v40 = vld [vmem:[%s1884_s7 + $0x320] ss:$8 sps:$4 sm:$0xff]   ;;  %v1715_v41 = vld [vmem:[%s1884_s7 + $0x214] ss:$8 sps:$4 sm:$0xff]   ;;  %v1728_v58 = vld [vmem:[%s1884_s7 + $0x3f0] ss:$8 sps:$4 sm:$0xff]  }
  0x45   : > { %1139 = vmatprep.subr.bf16.mxu1 %v1631_v42  ;;  %v1718_v42 = vld [vmem:[%s1884_s7 + $0x314] ss:$8 sps:$4 sm:$0xff]   ;;  %v1736_v60 = vld [vmem:[%s1884_s7 + $0x3e4] ss:$8 sps:$4 sm:$0xff]   ;;  %v1734_v62 = vld [vmem:[%s1884_s7 + $0x3e0] ss:$8 sps:$4 sm:$0xff]  }
  0x46   : > { %v1742_v0 = vld [vmem:[%s1884_s7 + $0x3d4] ss:$8 sps:$4 sm:$0xff]  }
  0x47   : > { %1097 = vmatpush2.bf16.msra.mxu0 %v1633_v43  ;;  %v1984_v43 = vld [vmem:[%s1886_s8 + $0x10] sm:$0xff] }
  0x48   : > { %1140 = vmatpush2.bf16.msra.mxu1 %v1634_v44  ;;  %1098 = vmatprep.subr.bf16.mxu0 %v1635_v45  ;;  %v1987_v44 = vld [vmem:[%s1886_s8 + $0x30] sm:$0xff]  ;;  %v1990_v45 = vld [vmem:[%s1886_s8 + $0x18] sm:$0xff] }
  0x49   : > { %1141 = vmatprep.subr.bf16.mxu1 %v1637_v46  ;;  %v1993_v46 = vld [vmem:[%s1886_s8 + $0x38] sm:$0xff] }
  0x4b   : > { %1099 = vmatpush2.bf16.msra.mxu0 %v1639_v47  ;;  %v1713_v47 = vld [vmem:[%s1884_s7 + $0x210] ss:$8 sps:$4 sm:$0xff]  }
  0x4c   : > { %1142 = vmatpush2.bf16.msra.mxu1 %v1640_v48  ;;  %1100 = vmatprep.subr.bf16.mxu0 %v1641_v49  ;;  %v1716_v48 = vld [vmem:[%s1884_s7 + $0x310] ss:$8 sps:$4 sm:$0xff]   ;;  %v1402_v49 = vcombine.high %v1984_v43, %v1987_v44 }
  0x4d   : > { %1143 = vmatprep.subr.bf16.mxu1 %v1643_v50  ;;  %v1721_v50 = vld [vmem:[%s1884_s7 + $0x204] ss:$8 sps:$4 sm:$0xff]  }
  0x4f   : > { %1101 = vmatpush2.bf16.msra.mxu0 %v1645_v51  ;;  %v1724_v51 = vld [vmem:[%s1884_s7 + $0x304] ss:$8 sps:$4 sm:$0xff]  }
  0x50   : > { %1144 = vmatpush2.bf16.msra.mxu1 %v1646_v52  ;;  %1102 = vmatprep.subr.bf16.mxu0 %v1647_v53  ;;  %v1404_v52 = vcombine.high %v1990_v45, %v1993_v46  ;;  %v1719_v53 = vld [vmem:[%s1884_s7 + $0x200] ss:$8 sps:$4 sm:$0xff]  }
  0x51   : > { %1145 = vmatprep.subr.bf16.mxu1 %v1649_v54  ;;  %v1722_v54 = vld [vmem:[%s1884_s7 + $0x300] ss:$8 sps:$4 sm:$0xff]  }
  0x53   : > { %1103 = vmatpush2.bf16.msra.mxu0 %v1651_v55  ;;  %v1727_v55 = vld [vmem:[%s1884_s7 + $0x2f4] ss:$8 sps:$4 sm:$0xff]  }
  0x54   : > { %1146 = vmatpush2.bf16.msra.mxu1 %v1652_v56  ;;  %1104 = vmatprep.subr.bf16.mxu0 %v1653_v61  ;;  %v1730_v56 = vld [vmem:[%s1884_s7 + $0x3f4] ss:$8 sps:$4 sm:$0xff]   ;;  %v1731_v61 = vld [vmem:[%s1884_s7 + $0x2e0] ss:$8 sps:$4 sm:$0xff]  }
  0x55   : > { %1147 = vmatprep.subr.bf16.mxu1 %v1655_v63  ;;  %v1739_v63 = vld [vmem:[%s1884_s7 + $0x2d4] ss:$8 sps:$4 sm:$0xff]  }
  0x57   : > { %1105 = vmatpush2.bf16.msra.mxu0 %v1657_v1  ;;  %v1737_v1 = vld [vmem:[%s1884_s7 + $0x2d0] ss:$8 sps:$4 sm:$0xff]  }
  0x58   : > { %1148 = vmatpush2.bf16.msra.mxu1 %v1658_v2  ;;  %1106 = vmatprep.subr.bf16.mxu0 %v1659_v3  ;;  %v1740_v2 = vld [vmem:[%s1884_s7 + $0x3d0] ss:$8 sps:$4 sm:$0xff]   ;;  %v1745_v3 = vld [vmem:[%s1884_s7 + $0x2c4] ss:$8 sps:$4 sm:$0xff]  }
  0x59   : > { %1149 = vmatprep.subr.bf16.mxu1 %v1661_v4  ;;  %v1748_v4 = vld [vmem:[%s1884_s7 + $0x3c4] ss:$8 sps:$4 sm:$0xff]  }
  0x5b   : > { %1107 = vmatpush2.bf16.msra.mxu0 %v1663_v5  ;;  %v1743_v5 = vld [vmem:[%s1884_s7 + $0x2c0] ss:$8 sps:$4 sm:$0xff]  }
  0x5c   : > { %1150 = vmatpush2.bf16.msra.mxu1 %v1664_v6  ;;  %1108 = vmatprep.subr.bf16.mxu0 %v1665_v7  ;;  %v1746_v6 = vld [vmem:[%s1884_s7 + $0x3c0] ss:$8 sps:$4 sm:$0xff]   ;;  %v1751_v7 = vld [vmem:[%s1884_s7 + $0x2b4] ss:$8 sps:$4 sm:$0xff]  }
  0x5d   : > { %1151 = vmatprep.subr.bf16.mxu1 %v1667_v8  ;;  %v1754_v8 = vld [vmem:[%s1884_s7 + $0x3b4] ss:$8 sps:$4 sm:$0xff]  }
  0x5f   : > { %1109 = vmatpush2.bf16.msra.mxu0 %v1669_v9  ;;  %v1749_v9 = vld [vmem:[%s1884_s7 + $0x2b0] ss:$8 sps:$4 sm:$0xff]  }
  0x60   : > { %1152 = vmatpush2.bf16.msra.mxu1 %v1670_v10  ;;  %1110 = vmatprep.subr.bf16.mxu0 %v1671_v11  ;;  %v1752_v10 = vld [vmem:[%s1884_s7 + $0x3b0] ss:$8 sps:$4 sm:$0xff]   ;;  %v1757_v11 = vld [vmem:[%s1884_s7 + $0x2a4] ss:$8 sps:$4 sm:$0xff]  }
  0x61   : > { %1153 = vmatprep.subr.bf16.mxu1 %v1673_v12  ;;  %v1760_v12 = vld [vmem:[%s1884_s7 + $0x3a4] ss:$8 sps:$4 sm:$0xff]  }
  0x63   : > { %1111 = vmatpush2.bf16.msra.mxu0 %v1675_v13  ;;  %v1755_v13 = vld [vmem:[%s1884_s7 + $0x2a0] ss:$8 sps:$4 sm:$0xff]  }
  0x64   : > { %1154 = vmatpush2.bf16.msra.mxu1 %v1676_v14  ;;  %1166 = vmatprep.subr.bf16.mxu0 %v1679_v15  ;;  %v1758_v14 = vld [vmem:[%s1884_s7 + $0x3a0] ss:$8 sps:$4 sm:$0xff]   ;;  %v1763_v15 = vld [vmem:[%s1884_s7 + $0x294] ss:$8 sps:$4 sm:$0xff]  }
  0x65   : > { %1209 = vmatprep.subr.bf16.mxu1 %v1682_v16  ;;  %v1766_v16 = vld [vmem:[%s1884_s7 + $0x394] ss:$8 sps:$4 sm:$0xff]  }
  0x66   : > { %1113 = vmatmul.mubr.bf16.vlgmr.msra.gmra.mxu0 %v1397_v17  ;;  %v1761_v17 = vld [vmem:[%s1884_s7 + $0x290] ss:$8 sps:$4 sm:$0xff]  }
  0x67   : > { %1156 = vmatmul.mubr.bf16.vlgmr.msra.gmra.mxu1 %v1399_v18  ;;  %1167 = vmatpush1.bf16.msra.mxu0 %v1677_v19  ;;  %v1764_v18 = vld [vmem:[%s1884_s7 + $0x390] ss:$8 sps:$4 sm:$0xff]   ;;  %v1769_v19 = vld [vmem:[%s1884_s7 + $0x284] ss:$8 sps:$4 sm:$0xff]  }
  0x68   : > { %1210 = vmatpush1.bf16.msra.mxu1 %v1680_v20  ;;  %1168 = vmatprep.subr.bf16.mxu0 %v1685_v21  ;;  %v1772_v20 = vld [vmem:[%s1884_s7 + $0x384] ss:$8 sps:$4 sm:$0xff]   ;;  %v1767_v21 = vld [vmem:[%s1884_s7 + $0x280] ss:$8 sps:$4 sm:$0xff]  }
  0x69   : > { %1211 = vmatprep.subr.bf16.mxu1 %v1688_v22  ;;  %1198 = vmatprep.mubr.bf16.mxu0 %v1402_v49  ;;  %v1770_v22 = vld [vmem:[%s1884_s7 + $0x380] ss:$8 sps:$4 sm:$0xff]  }
  0x6a   : > { %1241 = vmatprep.mubr.bf16.mxu1 %v1404_v52 }
  0x6b   : > { %1169 = vmatpush1.bf16.msra.mxu0 %v1683_v23  ;;  %v1401_v23 = vcombine.low %v1984_v43, %v1987_v44  ;;  %v261_v44 = vld [vmem:[#allocation2] sm:$0xff] }
  0x6c   : > { %1212 = vmatpush1.bf16.msra.mxu1 %v1686_v24  ;;  %1170 = vmatprep.subr.bf16.mxu0 %v1691_v25  ;;  %v1403_v24 = vcombine.low %v1990_v45, %v1993_v46 }
  0x6d   : > { %1213 = vmatprep.subr.bf16.mxu1 %v1694_v26 }
  0x6f   : > { %1171 = vmatpush1.bf16.msra.mxu0 %v1689_v27 }
  0x70   : > { %1214 = vmatpush1.bf16.msra.mxu1 %v1692_v28  ;;  %1172 = vmatprep.subr.bf16.mxu0 %v1697_v29 }
  0x71   : > { %1215 = vmatprep.subr.bf16.mxu1 %v1700_v30 }
  0x73   : > { %1173 = vmatpush1.bf16.msra.mxu0 %v1695_v31 }
  0x74   : > { %1216 = vmatpush1.bf16.msra.mxu1 %v1698_v32  ;;  %1174 = vmatprep.subr.bf16.mxu0 %v1703_v33 }
  0x75   : > { %1217 = vmatprep.subr.bf16.mxu1 %v1706_v34 }
  0x77   : > { %1175 = vmatpush1.bf16.msra.mxu0 %v1701_v35 }
  0x78   : > { %1218 = vmatpush1.bf16.msra.mxu1 %v1704_v36  ;;  %1176 = vmatprep.subr.bf16.mxu0 %v1709_v37 }
  0x79   : > { %1219 = vmatprep.subr.bf16.mxu1 %v1712_v38  ;;  %v260_v38 = vld [vmem:[#allocation2 + $0x10] sm:$0xff] }
  0x7b   : > { %1177 = vmatpush1.bf16.msra.mxu0 %v1707_v39 }
  0x7c   : > { %1220 = vmatpush1.bf16.msra.mxu1 %v1710_v40  ;;  %1178 = vmatprep.subr.bf16.mxu0 %v1715_v41 }
  0x7d   : > { %1221 = vmatprep.subr.bf16.mxu1 %v1718_v42 }
  0x7f   : > { %1179 = vmatpush1.bf16.msra.mxu0 %v1713_v47 }
  0x80   : > { %1222 = vmatpush1.bf16.msra.mxu1 %v1716_v48  ;;  %1180 = vmatprep.subr.bf16.mxu0 %v1721_v50 }
  0x81   : > { %1223 = vmatprep.subr.bf16.mxu1 %v1724_v51  ;;  %v262_v51 = vld [vmem:[#allocation2 + $0x18] sm:$0xff] }
  0x83   : > { %1181 = vmatpush1.bf16.msra.mxu0 %v1719_v53 }
  0x84   : > { %1224 = vmatpush1.bf16.msra.mxu1 %v1722_v54  ;;  %1182 = vmatprep.subr.bf16.mxu0 %v1727_v55 }
  0x85   : > { %1225 = vmatprep.subr.bf16.mxu1 %v1730_v56  ;;  %v263_v56 = vld [vmem:[#allocation2 + $0x8] sm:$0xff] }
  0x87   : > { %1183 = vmatpush2.bf16.msra.mxu0 %v1725_v57 }
  0x88   : > { %1226 = vmatpush2.bf16.msra.mxu1 %v1728_v58  ;;  %1184 = vmatprep.subr.bf16.mxu0 %v1733_v59 }
  0x89   : > { %1227 = vmatprep.subr.bf16.mxu1 %v1736_v60 }
  0x8b   : > { %1185 = vmatpush2.bf16.msra.mxu0 %v1731_v61 }
  0x8c   : > { %1228 = vmatpush2.bf16.msra.mxu1 %v1734_v62  ;;  %1186 = vmatprep.subr.bf16.mxu0 %v1739_v63 }
  0x8d   : > { %1229 = vmatprep.subr.bf16.mxu1 %v1742_v0 }
  0x8f   : > { %1187 = vmatpush2.bf16.msra.mxu0 %v1737_v1 }
  0x90   : > { %1230 = vmatpush2.bf16.msra.mxu1 %v1740_v2  ;;  %1188 = vmatprep.subr.bf16.mxu0 %v1745_v3 }
  0x91   : > { %1231 = vmatprep.subr.bf16.mxu1 %v1748_v4 }
  0x93   : > { %1189 = vmatpush2.bf16.msra.mxu0 %v1743_v5 }
  0x94   : > { %1232 = vmatpush2.bf16.msra.mxu1 %v1746_v6  ;;  %1190 = vmatprep.subr.bf16.mxu0 %v1751_v7 }
  0x95   : > { %1233 = vmatprep.subr.bf16.mxu1 %v1754_v8 }
  0x97   : > { %1191 = vmatpush2.bf16.msra.mxu0 %v1749_v9 }
  0x98   : > { %1234 = vmatpush2.bf16.msra.mxu1 %v1752_v10  ;;  %1192 = vmatprep.subr.bf16.mxu0 %v1757_v11 }
  0x99   : > { %1235 = vmatprep.subr.bf16.mxu1 %v1760_v12 }
  0x9b   : > { %1193 = vmatpush2.bf16.msra.mxu0 %v1755_v13 }
  0x9c   : > { %1236 = vmatpush2.bf16.msra.mxu1 %v1758_v14  ;;  %1194 = vmatprep.subr.bf16.mxu0 %v1763_v15 }
  0x9d   : > { %1237 = vmatprep.subr.bf16.mxu1 %v1766_v16 }
  0x9f   : > { %1195 = vmatpush2.bf16.msra.mxu0 %v1761_v17 }
  0xa0   : > { %1238 = vmatpush2.bf16.msra.mxu1 %v1764_v18  ;;  %1196 = vmatprep.subr.bf16.mxu0 %v1769_v19 }
  0xa1   : > { %1239 = vmatprep.subr.bf16.mxu1 %v1772_v20 }
  0xa3   : > { %1197 = vmatpush2.bf16.msra.mxu0 %v1767_v21 }
  0xa4   : > { %1240 = vmatpush2.bf16.msra.mxu1 %v1770_v22 }
  0xa6   : > { %1199 = vmatmul.mubr.bf16.vlgmr.msra.gmra.mxu0 %v1401_v23 }
  0xa7   : > { %1242 = vmatmul.mubr.bf16.vlgmr.msra.gmra.mxu1 %v1403_v24 }
 0x126   : > { %v1114_v25 = vpop.f32.mrf.mxu0 }
 0x127   : > { %v1157_v26 = vpop.f32.mrf.mxu1 }
 0x128   : > { %v1116_v27 = vpop.f32.mrf.mxu0  ;;  %v1158_v33 = vadd.f32 %v1157_v26, %v1114_v25 }
 0x129   : > { %v1159_v28 = vpop.f32.mrf.mxu1 }
 0x12a   : > { %v1118_v29 = vpop.f32.mrf.mxu0  ;;  %v1160_v36 = vadd.f32 %v1159_v28, %v1116_v27 }
 0x12b   : > { %v1161_v30 = vpop.f32.mrf.mxu1 }
 0x12c   : > { %v1120_v31 = vpop.f32.mrf.mxu0  ;;  %v1162_v41 = vadd.f32 %v1161_v30, %v1118_v29 }
 0x12d   : > { %v1163_v32 = vpop.f32.mrf.mxu1 }
 0x12e   : > { %v1164_v47 = vadd.f32 %v1163_v32, %v1120_v31 }
 0x166   : > { %v1200_v34 = vpop.f32.mrf.mxu0 }
 0x167   : > { %v1243_v35 = vpop.f32.mrf.mxu1  ;;  %v1201_v37 = vadd.f32 %v1200_v34, %v1158_v33 }
 0x168   : > { %v1202_v39 = vpop.f32.mrf.mxu0 }
 0x169   : > { %v1245_v40 = vpop.f32.mrf.mxu1  ;;  %v1244_v42 = vadd.f32 %v1243_v35, %v1201_v37  ;;  %v1203_v43 = vadd.f32 %v1202_v39, %v1160_v36 }
 0x16a   : > { %v1204_v45 = vpop.f32.mrf.mxu0 }
 0x16b   : > { %v1247_v46 = vpop.f32.mrf.mxu1  ;;  %v1252_v48 = vadd.f32 %v1244_v42, %v260_v38  ;;  %v1246_v49 = vadd.f32 %v1245_v40, %v1203_v43  ;;  %v1205_v50 = vadd.f32 %v1204_v45, %v1162_v41 }
 0x16c   : > { %v1206_v52 = vpop.f32.mrf.mxu0 }
 0x16d   : > { %1256 = vst [vmem:[#allocation2 + $0x10] sm:$0xff] %v1252_v48  ;;  %v1253_v53 = vadd.f32 %v1246_v49, %v261_v44  ;;  %v1248_v54 = vadd.f32 %v1247_v46, %v1205_v50  ;;  %v1207_v55 = vadd.f32 %v1206_v52, %v1164_v47  ;;  %v1249_v57 = vpop.f32.mrf.mxu1 }
 0x16f   : > { %1257 = vst [vmem:[#allocation2] sm:$0xff] %v1253_v53  ;;  %v1254_v58 = vadd.f32 %v1248_v54, %v262_v51  ;;  %v1250_v59 = vadd.f32 %v1249_v57, %v1207_v55  ;;  %1263 = sbr.rel (%p1533_p11) target bundleno = 387 (0x183), region = 63 }
 0x171   : > { %1258 = vst [vmem:[#allocation2 + $0x18] sm:$0xff] %v1254_v58  ;;  %v1255_v60 = vadd.f32 %v1250_v59, %v263_v56 }
 0x173   : > { %1259 = vst [vmem:[#allocation2 + $0x8] sm:$0xff] %v1255_v60 }
 0x174   : > { %v1270_v61 = vlaneseq  ;;  %v1268_v63 = vld [vmem:[%s2074_s2] sm:$0x3]  ;;  %v1264_v0 = vld [vmem:[#allocation2 + $0x10] sm:$0xff] }
 0x176   : > { %v1271_v62 = vshrl.u32 %v1270_v61, 7  ;;  %v1265_v3 = vld [vmem:[#allocation2] sm:$0xff] }
 0x178   : > { %v1272_v1 = vsub.s32 0, %v1271_v62  ;;  %v1276_v2 = vsub.s32 1, %v1271_v62  ;;  %v1266_v4 = vld [vmem:[#allocation2 + $0x18] sm:$0xff] }
 0x17a   : > { %v1267_v5 = vld [vmem:[#allocation2 + $0x8] sm:$0xff]  ;;  %v1273_v6 = vrot.slane %v1268_v63, %v1272_v1  ;;  %v1277_v7 = vrot.slane %v1268_v63, %v1276_v2 }
 0x17c   : > { %v1280_v8 = vadd.f32 %v1273_v6, %v1264_v0  ;;  %v1281_v9 = vadd.f32 %v1277_v7, %v1265_v3  ;;  %v1282_v10 = vadd.f32 %v1273_v6, %v1266_v4  ;;  %v1283_v11 = vadd.f32 %v1277_v7, %v1267_v5 }
 0x17e   : > { %vm1284_vm0 = vcmp.ge.f32.partialorder %v1280_v8, 0.0  ;;  %v1288_v12 = vmul.f32 0.2, %v1280_v8  ;;  %vm1285_vm1 = vcmp.ge.f32.partialorder %v1281_v9, 0.0  ;;  %v1289_v13 = vmul.f32 0.2, %v1281_v9 }
 0x17f   : > { %vm1286_vm2 = vcmp.ge.f32.partialorder %v1282_v10, 0.0  ;;  %v1290_v14 = vmul.f32 0.2, %v1282_v10  ;;  %vm1287_vm3 = vcmp.ge.f32.partialorder %v1283_v11, 0.0  ;;  %v1291_v15 = vmul.f32 0.2, %v1283_v11 }
 0x180   : > { %v1292_v16 = vsel %vm1284_vm0, %v1280_v8, %v1288_v12  ;;  %v1293_v17 = vsel %vm1285_vm1, %v1281_v9, %v1289_v13 }
 0x181   : > { %1296 = vst [vmem:[%s2075_s3] sm:$0xff] %v1292_v16  ;;  %1297 = vst [vmem:[%s2075_s3 + $0x8] sm:$0xff] %v1293_v17  ;;  %v1294_v18 = vsel %vm1286_vm2, %v1282_v10, %v1290_v14  ;;  %v1295_v19 = vsel %vm1287_vm3, %v1283_v11, %v1291_v15 }
 0x182   : > { %1298 = vst [vmem:[%s2075_s3 + $0x10] sm:$0xff] %v1294_v18  ;;  %1299 = vst [vmem:[%s2075_s3 + $0x18] sm:$0xff] %v1295_v19 }
 0x183 PF: > { %s13_s16 = sadd.s32 1, %s1811_s16   ;;  %s2076_s12 = smov %s1799_s13 }
 0x184   : > { %p10_p12 = scmp.ge.s32.totalorder %s13_s16, 4   ;;  %s2077_s13 = smov %s1869_s20 }
 0x185   : > { %s2078_s14 = smov %s1807_s15  ;;  %s2079_s15 = smov %s2081_s17 }
 0x186   :  { %12 = sbr.rel (!%p10_p12) target bundleno = 3 (0x3), region = 101 }

// kernel: _forward_impl.9
= control target key start
LH: loop header
LB: loop body
LE: loop exit
PB: predicated region body
PF: predicated region fallthrough
CT: control target
= control target key end

     0   :  { %s1446_s12 = smov 0   ;;  %s1448_s13 = smov 0   ;;  %s1598_s0 = inlined_call_operand.vmem [shape: bf16[16,4096], index: 0, kind: input, shape index: {}]   ;;  %s1599_s1 = inlined_call_operand.vmem [shape: bf16[4096,128], index: 1, kind: input, shape index: {}]   ;;  %s1600_s2 = inlined_call_operand.vmem [shape: f32[1,128], index: 2, kind: input, shape index: {}]   ;;  %s1601_s3 = inlined_call_operand.vmem [shape: f32[16,128], index: 3, kind: output, shape index: {}]  }
   0x1   :  { %s1450_s14 = smov 0   ;;  %s1452_s15 = smov 0  }
   0x2   :  { %s1454_s16 = smov 0  }
   0x3 LB: > { %s22_s17 = sadd.s32 1, %s1419_s15  ;;  %p41_p1 = scmp.ne.s32.totalorder %s1411_s13, %s1407_s12  ;;  %s1423_s16 = sphi %s1454_s16, %s13_s16   ;;  %s1419_s15 = sphi %s1452_s15, %s1605_s15   ;;  %s1415_s14 = sphi %s1450_s14, %s1604_s14   ;;  %s1411_s13 = sphi %s1448_s13, %s1603_s13   ;;  %s1407_s12 = sphi %s1446_s12, %s1602_s12  }
   0x4   : > { %p23_p0 = scmp.ge.s32.totalorder %s22_s17, 4  ;;  %p42_p2 = scmp.eq.s32.totalorder %s1423_s16, 0 }
   0x5   : > { %s34_s19 = sadd.s32 1, %s1411_s13  ;;  %p1096_p5 = scmp.ge.s32.totalorder %s1423_s16, 4 }
   0x6   : > { %s1607_s17 = smov (%p23_p0, %s22_s17), 0  ;;  %p43_p3 = por %p42_p2, %p41_p1 }
   0x7   : > { %s30_s18 = ssub.s32 %s1419_s15, %s1607_s17  ;;  %143 = sbr.rel (%p1096_p5) target bundleno = 20 (0x14), region = 20 }
   0x8   : > { %p32_p4 = scmp.eq.s32.totalorder %s30_s18, 0 }
   0xa   : > { %s1481_s20 = scalar_select %p32_p4, %s1411_s13, %s34_s19  }
   0xc   : > { %146 = sbr.rel (!%p43_p3) target bundleno = 20 (0x14), region = 24  ;;  %s148_s21 = sand.u32 (%p43_p3), 1, %s1411_s13  }
   0xd   : > { %s1183_s22 = sshll.u32 (%p43_p3), %s1419_s15, 5  ;;  %s1097_s23 = sshll.u32 (%p43_p3), %s148_s21, 6 }
   0xe   : > { %s156_s26 = scalar_lea.vmem (%p43_p3), %s1598_s0, %s1183_s22  ;;  %s150_s27 = scalar_lea.vmem (%p43_p3), [#allocation3], %s1097_s23 }
   0xf   : > { %v169_v0 = vld [vmem:[%s156_s26] sm:$0xff] (%p43_p3)  ;;  %v171_v1 = vld [vmem:[%s156_s26 + $0x8] sm:$0xff] (%p43_p3)  ;;  %v173_v2 = vld [vmem:[%s156_s26 + $0x10] sm:$0xff] (%p43_p3) }
  0x10   : > { %170 = vst [vmem:[%s150_s27] sm:$0xff] (%p43_p3), %v169_v0  ;;  %172 = vst [vmem:[%s150_s27 + $0x8] sm:$0xff] (%p43_p3), %v171_v1  ;;  %v175_v3 = vld [vmem:[%s156_s26 + $0x18] sm:$0xff] (%p43_p3)  ;;  %v177_v4 = vld [vmem:[%s156_s26 + $0x80] sm:$0xff] (%p43_p3) }
  0x11   : > { %174 = vst [vmem:[%s150_s27 + $0x10] sm:$0xff] %v173_v2  ;;  %v179_v5 = vld [vmem:[%s156_s26 + $0x88] sm:$0xff]  ;;  %176 = vst [vmem:[%s150_s27 + $0x18] sm:$0xff] %v175_v3  ;;  %v181_v6 = vld [vmem:[%s156_s26 + $0x90] sm:$0xff] }
  0x12   : > { %178 = vst [vmem:[%s150_s27 + $0x20] sm:$0xff] %v177_v4  ;;  %180 = vst [vmem:[%s150_s27 + $0x28] sm:$0xff] %v179_v5  ;;  %v183_v7 = vld [vmem:[%s156_s26 + $0x98] sm:$0xff] }
  0x13   : > { %182 = vst [vmem:[%s150_s27 + $0x30] sm:$0xff] %v181_v6  ;;  %184 = vst [vmem:[%s150_s27 + $0x38] sm:$0xff] %v183_v7 }
  0x14 PF: > { %p1100_p6 = scmp.ge.s32.totalorder %s1423_s16, 1  ;;  %p198_p7 = scmp.lt.s32.totalorder %s1423_s16, 5 }
  0x16   : > { %p199_p8 = pnand %p1100_p6, %p198_p7 }
  0x17   : > { %s205_s28 = sand.u32 (!%p199_p8), 1, %s1407_s12   ;;  %s1102_s29 = sshll.u32 (!%p199_p8), %s1415_s14, 7 }
  0x18   : > { %202 = sbr.rel (%p199_p8) target bundleno = 354 (0x162), region = 51  ;;  %s1101_s30 = sshll.u32 (!%p199_p8), %s205_s28, 6 }
  0x19   : > { %p236_p9 = scmp.lt.s32.totalorder (!%p199_p8), %s1102_s29, 511  ;;  %s1498_s8 = scalar_lea.vmem (!%p199_p8), [#allocation3], %s1101_s30 }
  0x1a   : > { %p1104_p10 = scmp.ne.s32.totalorder (!%p199_p8), %s1415_s14, 0 }
  0x1d   : > { %s1609_s29 = smov (!%p236_p9, %s1102_s29), 511  ;;  %251 = sbr.rel (%p1104_p10) target bundleno = 36 (0x24), region = 59 }
  0x1e   : > { %s1103_s4 = sshll.u32 %s1609_s29, 2 }
  0x1f   : > { %s1496_s7 = scalar_lea.vmem %s1599_s1, %s1103_s4 }
  0x22   : > { %v1425_v8 = vmov 0.0  }
  0x23   : > { %252 = vst [vmem:[#allocation2] sm:$0xff] %v1425_v8  ;;  %253 = vst [vmem:[#allocation2 + $0x8] sm:$0xff] %v1425_v8 }
  0x24 PF: > { %v1313_v9 = vld [vmem:[%s1496_s7 + $0x78] sm:$0xff]   ;;  %v1317_v13 = vld [vmem:[%s1496_s7 + $0x70] sm:$0xff]   ;;  %v1321_v17 = vld [vmem:[%s1496_s7 + $0x68] sm:$0xff]   ;;  %p1177_p11 = scmp.ne.s32.totalorder %s1415_s14, 3 }
  0x25   : > { %v1314_v10 = vld [vmem:[%s1496_s7 + $0xf8] sm:$0xff]   ;;  %1184 = vmatprep.subr.bf16.mxu0 %v1313_v9  ;;  %v1318_v14 = vld [vmem:[%s1496_s7 + $0xf0] sm:$0xff]   ;;  %v1322_v18 = vld [vmem:[%s1496_s7 + $0xe8] sm:$0xff]  }
  0x26   : > { %v1315_v11 = vld [vmem:[%s1496_s7 + $0x38] sm:$0xff]   ;;  %1206 = vmatprep.subr.bf16.mxu1 %v1314_v10  ;;  %v1319_v15 = vld [vmem:[%s1496_s7 + $0x30] sm:$0xff]   ;;  %v1323_v19 = vld [vmem:[%s1496_s7 + $0x28] sm:$0xff]  }
  0x27   : > { %v1316_v12 = vld [vmem:[%s1496_s7 + $0xb8] sm:$0xff]   ;;  %1185 = vmatpush3.bf16.msra.mxu0 %v1315_v11  ;;  %v1320_v16 = vld [vmem:[%s1496_s7 + $0xb0] sm:$0xff]   ;;  %v1324_v20 = vld [vmem:[%s1496_s7 + $0xa8] sm:$0xff]  }
  0x28   : > { %1207 = vmatpush3.bf16.msra.mxu1 %v1316_v12  ;;  %1186 = vmatprep.subr.bf16.mxu0 %v1317_v13  ;;  %v1325_v21 = vld [vmem:[%s1496_s7 + $0x60] sm:$0xff]   ;;  %v1329_v25 = vld [vmem:[%s1496_s7 + $0x58] sm:$0xff]   ;;  %v1333_v29 = vld [vmem:[%s1496_s7 + $0x50] sm:$0xff]  }
  0x29   : > { %1208 = vmatprep.subr.bf16.mxu1 %v1318_v14  ;;  %v1326_v22 = vld [vmem:[%s1496_s7 + $0xe0] sm:$0xff]   ;;  %v1330_v26 = vld [vmem:[%s1496_s7 + $0xd8] sm:$0xff]   ;;  %v1334_v30 = vld [vmem:[%s1496_s7 + $0xd0] sm:$0xff]  }
  0x2a   : > { %v1327_v23 = vld [vmem:[%s1496_s7 + $0x20] sm:$0xff]   ;;  %v1331_v27 = vld [vmem:[%s1496_s7 + $0x18] sm:$0xff]   ;;  %v1335_v31 = vld [vmem:[%s1496_s7 + $0x10] sm:$0xff]  }
  0x2b   : > { %1187 = vmatpush3.bf16.msra.mxu0 %v1319_v15  ;;  %v1328_v24 = vld [vmem:[%s1496_s7 + $0xa0] sm:$0xff]   ;;  %v1332_v28 = vld [vmem:[%s1496_s7 + $0x98] sm:$0xff]   ;;  %v1336_v32 = vld [vmem:[%s1496_s7 + $0x90] sm:$0xff]  }
  0x2c   : > { %1209 = vmatpush3.bf16.msra.mxu1 %v1320_v16  ;;  %1188 = vmatprep.subr.bf16.mxu0 %v1321_v17  ;;  %v1337_v33 = vld [vmem:[%s1496_s7 + $0x48] sm:$0xff]   ;;  %v1341_v37 = vld [vmem:[%s1496_s7 + $0x40] sm:$0xff]   ;;  %v256_v41 = vld [vmem:[%s1498_s8] sm:$0xff] }
  0x2d   : > { %1210 = vmatprep.subr.bf16.mxu1 %v1322_v18  ;;  %v1338_v34 = vld [vmem:[%s1496_s7 + $0xc8] sm:$0xff]   ;;  %v1342_v38 = vld [vmem:[%s1496_s7 + $0xc0] sm:$0xff]   ;;  %v260_v42 = vld [vmem:[%s1498_s8 + $0x20] sm:$0xff] }
  0x2e   : > { %v1339_v35 = vld [vmem:[%s1496_s7 + $0x8] sm:$0xff]   ;;  %v1343_v39 = vld [vmem:[%s1496_s7] sm:$0xff]   ;;  %v257_v43 = vld [vmem:[%s1498_s8 + $0x8] sm:$0xff]  ;;  %v1105_v44 = vcombine.low %v256_v41, %v260_v42  ;;  %v1106_v45 = vcombine.high %v256_v41, %v260_v42 }
  0x2f   : > { %1189 = vmatpush3.bf16.msra.mxu0 %v1323_v19  ;;  %v1340_v36 = vld [vmem:[%s1496_s7 + $0x88] sm:$0xff]   ;;  %v1344_v40 = vld [vmem:[%s1496_s7 + $0x80] sm:$0xff]   ;;  %v261_v46 = vld [vmem:[%s1498_s8 + $0x28] sm:$0xff] }
  0x30   : > { %1211 = vmatpush3.bf16.msra.mxu1 %v1324_v20  ;;  %1190 = vmatprep.subr.bf16.mxu0 %v1325_v21  ;;  %v1107_v47 = vcombine.low %v257_v43, %v261_v46  ;;  %v1108_v48 = vcombine.high %v257_v43, %v261_v46  ;;  %v1345_v49 = vld [vmem:[%s1496_s7 + $0x178] sm:$0xff]   ;;  %v1349_v53 = vld [vmem:[%s1496_s7 + $0x170] sm:$0xff]   ;;  %v1353_v57 = vld [vmem:[%s1496_s7 + $0x168] sm:$0xff]  }
  0x31   : > { %1212 = vmatprep.subr.bf16.mxu1 %v1326_v22  ;;  %848 = vmatprep.mubr.bf16.mxu0 %v1106_v45  ;;  %v1346_v50 = vld [vmem:[%s1496_s7 + $0x1f8] sm:$0xff]   ;;  %v1350_v54 = vld [vmem:[%s1496_s7 + $0x1f0] sm:$0xff]   ;;  %v1354_v58 = vld [vmem:[%s1496_s7 + $0x1e8] sm:$0xff]  }
  0x32   : > { %889 = vmatprep.mubr.bf16.mxu1 %v1108_v48  ;;  %v1347_v51 = vld [vmem:[%s1496_s7 + $0x138] sm:$0xff]   ;;  %v1351_v55 = vld [vmem:[%s1496_s7 + $0x130] sm:$0xff]   ;;  %v1355_v59 = vld [vmem:[%s1496_s7 + $0x128] sm:$0xff]  }
  0x33   : > { %1191 = vmatpush3.bf16.msra.mxu0 %v1327_v23  ;;  %v1348_v52 = vld [vmem:[%s1496_s7 + $0x1b8] sm:$0xff]   ;;  %v1352_v56 = vld [vmem:[%s1496_s7 + $0x1b0] sm:$0xff]   ;;  %v1356_v60 = vld [vmem:[%s1496_s7 + $0x1a8] sm:$0xff]  }
  0x34   : > { %1213 = vmatpush3.bf16.msra.mxu1 %v1328_v24  ;;  %1192 = vmatprep.subr.bf16.mxu0 %v1329_v25  ;;  %v1357_v61 = vld [vmem:[%s1496_s7 + $0x160] sm:$0xff]   ;;  %v1361_v1 = vld [vmem:[%s1496_s7 + $0x158] sm:$0xff]   ;;  %v1365_v5 = vld [vmem:[%s1496_s7 + $0x150] sm:$0xff]  }
  0x35   : > { %1214 = vmatprep.subr.bf16.mxu1 %v1330_v26  ;;  %v1358_v62 = vld [vmem:[%s1496_s7 + $0x1e0] sm:$0xff]   ;;  %v1362_v2 = vld [vmem:[%s1496_s7 + $0x1d8] sm:$0xff]   ;;  %v1366_v6 = vld [vmem:[%s1496_s7 + $0x1d0] sm:$0xff]  }
  0x36   : > { %v1359_v63 = vld [vmem:[%s1496_s7 + $0x120] sm:$0xff]   ;;  %v1363_v3 = vld [vmem:[%s1496_s7 + $0x118] sm:$0xff]   ;;  %v1367_v7 = vld [vmem:[%s1496_s7 + $0x110] sm:$0xff]  }
  0x37   : > { %1193 = vmatpush3.bf16.msra.mxu0 %v1331_v27  ;;  %v1360_v0 = vld [vmem:[%s1496_s7 + $0x1a0] sm:$0xff]   ;;  %v1364_v4 = vld [vmem:[%s1496_s7 + $0x198] sm:$0xff]   ;;  %v1368_v8 = vld [vmem:[%s1496_s7 + $0x190] sm:$0xff]  }
  0x38   : > { %1215 = vmatpush3.bf16.msra.mxu1 %v1332_v28  ;;  %1194 = vmatprep.subr.bf16.mxu0 %v1333_v29  ;;  %v1369_v9 = vld [vmem:[%s1496_s7 + $0x148] sm:$0xff]   ;;  %v1373_v13 = vld [vmem:[%s1496_s7 + $0x140] sm:$0xff]  }
  0x39   : > { %1216 = vmatprep.subr.bf16.mxu1 %v1334_v30  ;;  %v1370_v10 = vld [vmem:[%s1496_s7 + $0x1c8] sm:$0xff]   ;;  %v1374_v14 = vld [vmem:[%s1496_s7 + $0x1c0] sm:$0xff]  }
  0x3a   : > { %v1371_v11 = vld [vmem:[%s1496_s7 + $0x108] sm:$0xff]   ;;  %v1375_v15 = vld [vmem:[%s1496_s7 + $0x100] sm:$0xff]  }
  0x3b   : > { %1195 = vmatpush3.bf16.msra.mxu0 %v1335_v31  ;;  %v1372_v12 = vld [vmem:[%s1496_s7 + $0x188] sm:$0xff]   ;;  %v1376_v16 = vld [vmem:[%s1496_s7 + $0x180] sm:$0xff]  }
  0x3c   : > { %1217 = vmatpush3.bf16.msra.mxu1 %v1336_v32  ;;  %1196 = vmatprep.subr.bf16.mxu0 %v1337_v33  ;;  %v258_v17 = vld [vmem:[%s1498_s8 + $0x10] sm:$0xff]  ;;  %v259_v21 = vld [vmem:[%s1498_s8 + $0x18] sm:$0xff] }
  0x3d   : > { %1218 = vmatprep.subr.bf16.mxu1 %v1338_v34  ;;  %v262_v18 = vld [vmem:[%s1498_s8 + $0x30] sm:$0xff]  ;;  %v263_v22 = vld [vmem:[%s1498_s8 + $0x38] sm:$0xff] }
  0x3e   : > { %v1109_v19 = vcombine.low %v258_v17, %v262_v18  ;;  %v1110_v20 = vcombine.high %v258_v17, %v262_v18  ;;  %v1111_v23 = vcombine.low %v259_v21, %v263_v22  ;;  %v1112_v24 = vcombine.high %v259_v21, %v263_v22 }
  0x3f   : > { %1197 = vmatpush3.bf16.msra.mxu0 %v1339_v35 }
  0x40   : > { %1219 = vmatpush3.bf16.msra.mxu1 %v1340_v36  ;;  %1198 = vmatprep.subr.bf16.mxu0 %v1341_v37 }
  0x41   : > { %1220 = vmatprep.subr.bf16.mxu1 %v1342_v38 }
  0x43   : > { %1199 = vmatpush3.bf16.msra.mxu0 %v1343_v39 }
  0x44   : > { %1221 = vmatpush3.bf16.msra.mxu1 %v1344_v40  ;;  %1228 = vmatprep.subr.bf16.mxu0 %v1345_v49 }
  0x45   : > { %1250 = vmatprep.subr.bf16.mxu1 %v1346_v50 }
  0x46   : > { %849 = vmatmul.mubr.bf16.vlgmr.msra.gmra.mxu0 %v1105_v44 }
  0x47   : > { %890 = vmatmul.mubr.bf16.vlgmr.msra.gmra.mxu1 %v1107_v47  ;;  %1229 = vmatpush3.bf16.msra.mxu0 %v1347_v51  ;;  %v254_v47 = vld [vmem:[#allocation2] sm:$0xff] }
  0x48   : > { %1251 = vmatpush3.bf16.msra.mxu1 %v1348_v52  ;;  %1230 = vmatprep.subr.bf16.mxu0 %v1349_v53 }
  0x49   : > { %1252 = vmatprep.subr.bf16.mxu1 %v1350_v54  ;;  %930 = vmatprep.mubr.bf16.mxu0 %v1110_v20 }
  0x4a   : > { %971 = vmatprep.mubr.bf16.mxu1 %v1112_v24 }
  0x4b   : > { %1231 = vmatpush3.bf16.msra.mxu0 %v1351_v55 }
  0x4c   : > { %1253 = vmatpush3.bf16.msra.mxu1 %v1352_v56  ;;  %1232 = vmatprep.subr.bf16.mxu0 %v1353_v57  ;;  %v255_v56 = vld [vmem:[#allocation2 + $0x8] sm:$0xff] }
  0x4d   : > { %1254 = vmatprep.subr.bf16.mxu1 %v1354_v58 }
  0x4f   : > { %1233 = vmatpush3.bf16.msra.mxu0 %v1355_v59 }
  0x50   : > { %1255 = vmatpush3.bf16.msra.mxu1 %v1356_v60  ;;  %1234 = vmatprep.subr.bf16.mxu0 %v1357_v61 }
  0x51   : > { %1256 = vmatprep.subr.bf16.mxu1 %v1358_v62 }
  0x53   : > { %1235 = vmatpush3.bf16.msra.mxu0 %v1359_v63 }
  0x54   : > { %1257 = vmatpush3.bf16.msra.mxu1 %v1360_v0  ;;  %1236 = vmatprep.subr.bf16.mxu0 %v1361_v1 }
  0x55   : > { %1258 = vmatprep.subr.bf16.mxu1 %v1362_v2 }
  0x57   : > { %1237 = vmatpush3.bf16.msra.mxu0 %v1363_v3 }
  0x58   : > { %1259 = vmatpush3.bf16.msra.mxu1 %v1364_v4  ;;  %1238 = vmatprep.subr.bf16.mxu0 %v1365_v5 }
  0x59   : > { %1260 = vmatprep.subr.bf16.mxu1 %v1366_v6 }
  0x5b   : > { %1239 = vmatpush3.bf16.msra.mxu0 %v1367_v7 }
  0x5c   : > { %1261 = vmatpush3.bf16.msra.mxu1 %v1368_v8  ;;  %1240 = vmatprep.subr.bf16.mxu0 %v1369_v9 }
  0x5d   : > { %1262 = vmatprep.subr.bf16.mxu1 %v1370_v10 }
  0x5f   : > { %1241 = vmatpush3.bf16.msra.mxu0 %v1371_v11 }
  0x60   : > { %1263 = vmatpush3.bf16.msra.mxu1 %v1372_v12  ;;  %1242 = vmatprep.subr.bf16.mxu0 %v1373_v13 }
  0x61   : > { %1264 = vmatprep.subr.bf16.mxu1 %v1374_v14 }
  0x63   : > { %1243 = vmatpush3.bf16.msra.mxu0 %v1375_v15 }
  0x64   : > { %1265 = vmatpush3.bf16.msra.mxu1 %v1376_v16 }
  0x66   : > { %931 = vmatmul.mubr.bf16.vlgmr.msra.gmra.mxu0 %v1109_v19 }
  0x67   : > { %972 = vmatmul.mubr.bf16.vlgmr.msra.gmra.mxu1 %v1111_v23 }
 0x106   : > { %v1200_v25 = vpop.f32.mrf.mxu0 }
 0x107   : > { %v1222_v26 = vpop.f32.mrf.mxu1 }
 0x108   : > { %v1201_v27 = vpop.f32.mrf.mxu0 }
 0x109   : > { %v1223_v28 = vpop.f32.mrf.mxu1  ;;  %v1202_v32 = vadd.f32 %v1201_v27, %v1200_v25 }
 0x10a   : > { %v1203_v29 = vpop.f32.mrf.mxu0  ;;  %v1224_v33 = vadd.f32 %v1223_v28, %v1222_v26 }
 0x10b   : > { %v1225_v30 = vpop.f32.mrf.mxu1 }
 0x10c   : > { %v1204_v31 = vpop.f32.mrf.mxu0  ;;  %v892_v38 = vadd.f32 %v1224_v33, %v1202_v32 }
 0x10d   : > { %v1226_v34 = vpop.f32.mrf.mxu1  ;;  %v1205_v39 = vadd.f32 %v1204_v31, %v1203_v29 }
 0x10e   : > { %v1227_v40 = vadd.f32 %v1226_v34, %v1225_v30 }
 0x110   : > { %v895_v49 = vadd.f32 %v1227_v40, %v1205_v39 }
 0x126   : > { %v1244_v35 = vpop.f32.mrf.mxu0 }
 0x127   : > { %v1266_v36 = vpop.f32.mrf.mxu1 }
 0x128   : > { %v1245_v37 = vpop.f32.mrf.mxu0 }
 0x129   : > { %v1246_v41 = vadd.f32 %v1245_v37, %v1244_v35  ;;  %v1267_v42 = vpop.f32.mrf.mxu1 }
 0x12a   : > { %v1247_v43 = vpop.f32.mrf.mxu0  ;;  %v1268_v45 = vadd.f32 %v1267_v42, %v1266_v36 }
 0x12b   : > { %v933_v44 = vadd.f32 %v1246_v41, %v892_v38  ;;  %v1269_v46 = vpop.f32.mrf.mxu1 }
 0x12c   : > { %v1248_v48 = vpop.f32.mrf.mxu0 }
 0x12d   : > { %v974_v50 = vadd.f32 %v1268_v45, %v933_v44  ;;  %v1249_v51 = vadd.f32 %v1248_v48, %v1247_v43  ;;  %v1270_v52 = vpop.f32.mrf.mxu1 }
 0x12e   : > { %v1271_v55 = vadd.f32 %v1270_v52, %v1269_v46 }
 0x12f   : > { %v980_v53 = vadd.f32 %v974_v50, %v254_v47  ;;  %v936_v54 = vadd.f32 %v1249_v51, %v895_v49 }
 0x131   : > { %982 = vst [vmem:[#allocation2] sm:$0xff] %v980_v53  ;;  %v977_v57 = vadd.f32 %v1271_v55, %v936_v54  ;;  %987 = sbr.rel (%p1177_p11) target bundleno = 354 (0x162), region = 63 }
 0x133   : > { %v981_v58 = vadd.f32 %v977_v57, %v255_v56 }
 0x135   : > { %983 = vst [vmem:[#allocation2 + $0x8] sm:$0xff] %v981_v58 }
 0x136   : > { %v1178_v60 = vld [vmem:[%s1600_s2] ss:$0 sm:$0xff] }
 0x138   : > { %v988_v59 = vld [vmem:[#allocation2] sm:$0xff] }
 0x139   : > { %v997_v62 = vadd.f32 %v1178_v60, %v988_v59 }
 0x13b   : > { %v999_v0 = vsub.f32 0.0, %v997_v62 }
 0x13c   : > { %v989_v61 = vld [vmem:[#allocation2 + $0x8] sm:$0xff] }
 0x13d   : > { %v998_v63 = vadd.f32 %v1178_v60, %v989_v61  ;;  %v1001_v2 = vmul.f32 1.442695, %v999_v0 }
 0x13f   : > { %v1000_v1 = vsub.f32 0.0, %v998_v63  ;;  %1377 = vpow2.f32 %v1001_v2 }
 0x141   : > { %v1003_v3 = vmul.f32 1.442695, %v1000_v1 }
 0x143   : > { %1379 = vpow2.f32 %v1003_v3 }
 0x14c   : > { %v1378_v4 = vpop.eup %1377 }
 0x14d   : > { %v1005_v6 = vadd.f32 1.0, %v1378_v4 }
 0x14f   : > { %1381 = vrcp.f32 %v1005_v6 }
 0x150   : > { %v1380_v5 = vpop.eup %1379 }
 0x151   : > { %v1006_v7 = vadd.f32 1.0, %v1380_v5 }
 0x153   : > { %1383 = vrcp.f32 %v1006_v7 }
 0x15c   : > { %v1382_v8 = vpop.eup %1381 }
 0x15d   : > { %1009 = vst [vmem:[%s1601_s3] sm:$0xff] %v1382_v8 }
 0x160   : > { %v1384_v9 = vpop.eup %1383 }
 0x161   : > { %1010 = vst [vmem:[%s1601_s3 + $0x8] sm:$0xff] %v1384_v9 }
 0x162 PF: > { %s13_s16 = sadd.s32 1, %s1423_s16   ;;  %s1602_s12 = smov %s1411_s13 }
 0x163   : > { %p10_p12 = scmp.ge.s32.totalorder %s13_s16, 6   ;;  %s1603_s13 = smov %s1481_s20 }
 0x164   : > { %s1604_s14 = smov %s1419_s15  ;;  %s1605_s15 = smov %s1607_s17 }
 0x165   :  { %12 = sbr.rel (!%p10_p12) target bundleno = 3 (0x3), region = 101 }

</bundles_post_ra>
